<compile_context>
chip_gen: v6e
topology: v6e:2x2x1
jax: 0.10.0
libtpu: 0.0.40
codegen_flags: <defaults>
</compile_context>

<pallas_src>
import functools

import numpy as np
import jax
import jax.numpy as jnp
from jax import lax
from jax.experimental import pallas as pl
from jax.experimental.pallas import tpu as pltpu


def _round_up(x, m):
    return ((x + m - 1) // m) * m


# ---------------------------------------------------------------------------
# Parameter construction (deterministic, mirrors STFT.__init__)
# ---------------------------------------------------------------------------
def make_forward_basis(filter_length, win_length=None, window="hann"):
    if win_length is None:
        win_length = filter_length
    cutoff = filter_length // 2 + 1

    fourier_basis = np.fft.fft(np.eye(filter_length))
    fourier_basis = np.vstack(
        [np.real(fourier_basis[:cutoff, :]), np.imag(fourier_basis[:cutoff, :])]
    ).astype(np.float32)  # (2*cutoff, filter_length)

    if window is not None:
        assert filter_length >= win_length
        # scipy.signal.get_window('hann', N, fftbins=True) == periodic Hann
        n = np.arange(win_length)
        w = 0.5 - 0.5 * np.cos(2.0 * np.pi * n / win_length)
        # librosa pad_center to filter_length
        lpad = (filter_length - win_length) // 2
        w = np.pad(w, (lpad, filter_length - win_length - lpad))
        fourier_basis = fourier_basis * w[None, :].astype(np.float32)

    return fourier_basis, cutoff


# ---------------------------------------------------------------------------
# Pallas kernel
# ---------------------------------------------------------------------------
def _stft_kernel(sig_ref, basis_ref, mag_ref, phase_ref, frames_ref, *,
                 num_chunks, frames_per_tile, hop, c_pad, precision):
    # sig_ref:    (TF + R - 1, hop)  hop-strided signal rows for this tile.
    # basis_ref:  (2*c_pad, K_pad)   windowed Fourier basis (real rows then
    #                                imag rows, each padded to c_pad sublanes).
    # mag_ref / phase_ref: (c_pad, TF) output tiles; lane dim = frames.
    # frames_ref: (TF, K_pad)        VMEM scratch staging the frame tile.
    TF = frames_per_tile

    # Stage the frame tile once: chunk r of frame f is the hop samples starting
    # at row f + r of the strided view, so chunk r of the whole tile is the
    # contiguous sublane window sig[r : r + TF, :] written at lane offset r*hop.
    for r in range(num_chunks):
        frames_ref[:, r * hop:(r + 1) * hop] = sig_ref[r:r + TF, :]

    # Single K_pad-deep NT matmul (contraction on the lane axis of both
    # operands).  Accumulation stays inside the MXU pipeline -- no VMEM
    # accumulator read-modify-write.
    acc = lax.dot_general(
        basis_ref[...], frames_ref[...],
        dimension_numbers=(((1,), (1,)), ((), ())),
        preferred_element_type=jnp.float32,
        precision=precision)                                  # (2*c_pad, TF)

    real = acc[:c_pad, :]
    imag = acc[c_pad:, :]
    mag_ref[...] = jnp.sqrt(real * real + imag * imag)
    phase_ref[...] = jnp.arctan2(imag, real)


# ---------------------------------------------------------------------------
# Wrapper
# ---------------------------------------------------------------------------
def stft_forward(input_data, forward_basis, filter_length, hop_length,
                 tf_max=512, precision=lax.Precision.HIGHEST):
    """input_data: (batch, num_samples) float32.
    Returns (magnitude, phase), each (batch, cutoff, num_frames), matching the
    PyTorch module."""
    B, T = input_data.shape
    K = filter_length
    hop = hop_length
    pad = K // 2
    cutoff = K // 2 + 1

    assert tf_max % 128 == 0, "frame tile must be a multiple of 128 lanes"

    c_pad = _round_up(cutoff, 8)          # sublane-aligned real/imag split
    R = -(-K // hop)                      # ceil(K / hop) chunks along filter
    K_pad = R * hop                       # staged contraction depth

    # ---- host-side basis prep: rows padded to c_pad halves, cols to K_pad ----
    fb = np.asarray(forward_basis, dtype=np.float32)          # (2*cutoff, K)
    basis_p = np.zeros((2 * c_pad, K_pad), np.float32)
    basis_p[:cutoff, :K] = fb[:cutoff]
    basis_p[c_pad:c_pad + cutoff, :K] = fb[cutoff:]
    basis_p = jnp.asarray(basis_p)

    # ---- reflect pad (same semantics as F.pad(..., mode='reflect')) ----
    padded = jnp.pad(input_data.astype(jnp.float32), ((0, 0), (pad, pad)),
                     mode="reflect")
    L = T + 2 * pad
    num_frames = (L - K) // hop + 1

    # ---- frame tiling ----
    TF = min(tf_max, _round_up(num_frames, 128))   # lane-dim tile, mult of 128
    F_pad = _round_up(num_frames, TF)
    n_tiles = F_pad // TF

    # Zero-pad / truncate so the hop-strided row view covers every (possibly
    # padded) frame.  Truncation is safe: basis columns k >= K are zero.
    num_rows = F_pad + R - 1
    L_need = num_rows * hop
    assert (num_frames - 1) * hop + K <= min(L, L_need)
    if L_need > L:
        padded = jnp.pad(padded, ((0, 0), (0, L_need - L)))
    else:
        padded = padded[:, :L_need]
    sig2d = padded.reshape(B, num_rows, hop)       # contiguous reshape

    # Per-tile overlapping signal windows: (B, n_tiles, TF + R - 1, hop).
    # Keeps kernel VMEM O(TF*hop) independent of signal length; each core only
    # fetches its own tiles.  HBM duplication is (R-1)/TF (< 1%).
    win_rows = TF + R - 1
    row_idx = (jnp.arange(n_tiles)[:, None] * TF
               + jnp.arange(win_rows)[None, :])                # (n_tiles, win_rows)
    sig_tiles = sig2d[:, row_idx, :]                           # (B, n_tiles, win_rows, hop)

    grid = (B, n_tiles)
    kernel = functools.partial(
        _stft_kernel, num_chunks=R, frames_per_tile=TF, hop=hop, c_pad=c_pad,
        precision=precision)

    # ---- explicit VMEM budget (double-buffered blocks + temporaries) ----
    block_bytes = 4 * (2 * win_rows * hop          # signal window (x2 buffers)
                       + 2 * 2 * c_pad * K_pad     # basis (x2 buffers)
                       + 2 * 2 * 2 * c_pad * TF)   # mag + phase tiles (x2)
    scratch_bytes = 4 * (TF * K_pad                # staged frame tile
                         + 6 * c_pad * TF)         # acc / real / imag temps
    vmem_limit = int(min(max(int(1.5 * (block_bytes + scratch_bytes)) + (4 << 20),
                             32 << 20),
                         64 << 20))

    flops = int(2 * B * F_pad * (2 * c_pad) * K_pad)
    transcendentals = int(2 * B * c_pad * F_pad)
    bytes_accessed = int(4 * (B * n_tiles * win_rows * hop
                              + 2 * c_pad * K_pad
                              + 2 * B * c_pad * F_pad))

    mag, phase = pl.pallas_call(
        kernel,
        out_shape=(
            jax.ShapeDtypeStruct((B, c_pad, F_pad), jnp.float32),
            jax.ShapeDtypeStruct((B, c_pad, F_pad), jnp.float32),
        ),
        grid=grid,
        in_specs=[
            # one overlapping signal window per (batch, frame-tile)
            pl.BlockSpec((None, None, win_rows, hop), lambda b, j: (b, j, 0, 0)),
            # small basis, fully resident (grid-invariant block index)
            pl.BlockSpec((2 * c_pad, K_pad), lambda b, j: (0, 0)),
        ],
        out_specs=(
            pl.BlockSpec((None, c_pad, TF), lambda b, j: (b, 0, j)),
            pl.BlockSpec((None, c_pad, TF), lambda b, j: (b, 0, j)),
        ),
        scratch_shapes=[pltpu.VMEM((TF, K_pad), jnp.float32)],
        compiler_params=pltpu.CompilerParams(
            dimension_semantics=("parallel", "parallel"),
            vmem_limit_bytes=vmem_limit),
        cost_estimate=pl.CostEstimate(
            flops=flops, transcendentals=transcendentals,
            bytes_accessed=bytes_accessed),
    )(sig_tiles, basis_p)

    # Output is already (B, freq, frame); drop the padded freq bins / frames.
    return mag[:, :cutoff, :num_frames], phase[:, :cutoff, :num_frames]


# ---------------------------------------------------------------------------
# Pure-JAX reference (for sanity checking the kernel)
# ---------------------------------------------------------------------------
def stft_reference(input_data, forward_basis, filter_length, hop_length):
    B, T = input_data.shape
    pad = filter_length // 2
    cutoff = filter_length // 2 + 1
    padded = jnp.pad(input_data, ((0, 0), (pad, pad)), mode="reflect")
    num_frames = (T + 2 * pad - filter_length) // hop_length + 1
    idx = (hop_length * jnp.arange(num_frames)[:, None]
           + jnp.arange(filter_length)[None, :])
    frames = padded[:, idx]  # (B, F, K)
    ft = jnp.einsum("bfk,ck->bcf", frames, jnp.asarray(forward_basis),
                    precision=lax.Precision.HIGHEST)
    real, imag = ft[:, :cutoff, :], ft[:, cutoff:, :]
    return jnp.sqrt(real * real + imag * imag), jnp.arctan2(imag, real)


if __name__ == "__main__":
    filter_length = 16
    hop_length = 4
    batch = 2
    num_samples = 64

    forward_basis, cutoff = make_forward_basis(filter_length)

    key = jax.random.PRNGKey(0)
    x = jax.random.normal(key, (batch, num_samples), dtype=jnp.float32)

    mag, phase = stft_forward(x, forward_basis, filter_length, hop_length)
    mag = jax.block_until_ready(mag)
    phase = jax.block_until_ready(phase)

    mag_ref, phase_ref = stft_reference(x, forward_basis, filter_length, hop_length)
    mag_np, phase_np = np.asarray(mag), np.asarray(phase)
    mag_ref, phase_ref = np.asarray(mag_ref), np.asarray(phase_ref)

    np.testing.assert_allclose(mag_np, mag_ref, rtol=1e-3, atol=1e-3)
    # Circular phase comparison (robust to the +/- pi branch cut on bins whose
    # imaginary part is analytically ~0, e.g. DC / Nyquist), restricted to bins
    # with non-negligible energy where phase is well conditioned.
    dphi = np.angle(np.exp(1j * (phase_np.astype(np.float64)
                                 - phase_ref.astype(np.float64))))
    significant = mag_ref > 1e-1
    assert np.max(np.abs(dphi[significant])) < 5e-3

    expected_frames = num_samples // hop_length + 1
    assert mag_np.shape == (batch, cutoff, expected_frames)
    assert phase_np.shape == (batch, cutoff, expected_frames)

    print("KERNEL_OK")
</pallas_src>

<mosaic_0001>
module attributes {stable_mosaic.version = 11 : i64} {
  func.func @_stft_kernel(%arg0: i32, %arg1: i32, %arg2: memref<1x1x131x4xf32, #tpu.memory_space<vmem>>, %arg3: memref<32x16xf32, #tpu.memory_space<vmem>>, %arg4: memref<1x16x128xf32, #tpu.memory_space<vmem>>, %arg5: memref<1x16x128xf32, #tpu.memory_space<vmem>>, %arg6: memref<128x16xf32, #tpu.memory_space<vmem>>) attributes {dimension_semantics = [#tpu.dimension_semantics<parallel>, #tpu.dimension_semantics<parallel>], iteration_bounds = array<i64: 2, 1>, scalar_prefetch = 0 : i64, scratch_operands = 1 : i64, tpu.core_type = #tpu.core_type<tc>, window_params = [{transform_indices = @transform_0, window_bounds = array<i64: 1, 1, 131, 4>}, {pipeline_mode = #tpu.pipeline_mode<synchronous>, transform_indices = @transform_1, window_bounds = array<i64: 32, 16>}, {transform_indices = @transform_2, window_bounds = array<i64: 1, 16, 128>}, {transform_indices = @transform_3, window_bounds = array<i64: 1, 16, 128>}]} {
    %c0 = arith.constant 0 : index
    %c0_0 = arith.constant 0 : index
    %c0_1 = arith.constant 0 : index
    %c0_2 = arith.constant 0 : index
    %0 = vector.load %arg2[%c0, %c0_0, %c0_1, %c0_2] : memref<1x1x131x4xf32, #tpu.memory_space<vmem>>, vector<1x1x128x4xf32>
    %1 = vector.shape_cast %0 : vector<1x1x128x4xf32> to vector<128x4xf32>
    %c0_3 = arith.constant 0 : index
    %c0_4 = arith.constant 0 : index
    %2 = vector.load %arg6[%c0_3, %c0_4] : memref<128x16xf32, #tpu.memory_space<vmem>>, vector<128x4xf32>
    tpu.vector_store %arg6[%c0_3, %c0_4], %1 {strides = array<i32>} : memref<128x16xf32, #tpu.memory_space<vmem>>, vector<128x4xf32>,
    %c0_5 = arith.constant 0 : index
    %c0_6 = arith.constant 0 : index
    %c1 = arith.constant 1 : index
    %c0_7 = arith.constant 0 : index
    %3 = vector.load %arg2[%c0_5, %c0_6, %c1, %c0_7] : memref<1x1x131x4xf32, #tpu.memory_space<vmem>>, vector<1x1x128x4xf32>
    %4 = vector.shape_cast %3 : vector<1x1x128x4xf32> to vector<128x4xf32>
    %c0_8 = arith.constant 0 : index
    %c4 = arith.constant 4 : index
    %5 = vector.load %arg6[%c0_8, %c4] : memref<128x16xf32, #tpu.memory_space<vmem>>, vector<128x4xf32>
    tpu.vector_store %arg6[%c0_8, %c4], %4 {strides = array<i32>} : memref<128x16xf32, #tpu.memory_space<vmem>>, vector<128x4xf32>,
    %c0_9 = arith.constant 0 : index
    %c0_10 = arith.constant 0 : index
    %c2 = arith.constant 2 : index
    %c0_11 = arith.constant 0 : index
    %6 = vector.load %arg2[%c0_9, %c0_10, %c2, %c0_11] : memref<1x1x131x4xf32, #tpu.memory_space<vmem>>, vector<1x1x128x4xf32>
    %7 = vector.shape_cast %6 : vector<1x1x128x4xf32> to vector<128x4xf32>
    %c0_12 = arith.constant 0 : index
    %c8 = arith.constant 8 : index
    %8 = vector.load %arg6[%c0_12, %c8] : memref<128x16xf32, #tpu.memory_space<vmem>>, vector<128x4xf32>
    tpu.vector_store %arg6[%c0_12, %c8], %7 {strides = array<i32>} : memref<128x16xf32, #tpu.memory_space<vmem>>, vector<128x4xf32>,
    %c0_13 = arith.constant 0 : index
    %c0_14 = arith.constant 0 : index
    %c3 = arith.constant 3 : index
    %c0_15 = arith.constant 0 : index
    %9 = vector.load %arg2[%c0_13, %c0_14, %c3, %c0_15] : memref<1x1x131x4xf32, #tpu.memory_space<vmem>>, vector<1x1x128x4xf32>
    %10 = vector.shape_cast %9 : vector<1x1x128x4xf32> to vector<128x4xf32>
    %c0_16 = arith.constant 0 : index
    %c12 = arith.constant 12 : index
    %11 = vector.load %arg6[%c0_16, %c12] : memref<128x16xf32, #tpu.memory_space<vmem>>, vector<128x4xf32>
    tpu.vector_store %arg6[%c0_16, %c12], %10 {strides = array<i32>} : memref<128x16xf32, #tpu.memory_space<vmem>>, vector<128x4xf32>,
    %c0_17 = arith.constant 0 : index
    %c0_18 = arith.constant 0 : index
    %12 = vector.load %arg3[%c0_17, %c0_18] : memref<32x16xf32, #tpu.memory_space<vmem>>, vector<32x16xf32>
    %c0_19 = arith.constant 0 : index
    %c0_20 = arith.constant 0 : index
    %13 = vector.load %arg6[%c0_19, %c0_20] : memref<128x16xf32, #tpu.memory_space<vmem>>, vector<128x16xf32>
    %cst = arith.constant dense<0.000000e+00> : vector<32x128xf32>
    %14 = tpu.matmul %12, %13, %cst {dimension_numbers = #tpu.dot_dimension_numbers<[1], [1], [0], [0], [0, 0, 1, 0], [], []>, precision = #tpu.contract_precision<fp32>} : vector<32x16xf32>, vector<128x16xf32>, vector<32x128xf32> -> vector<32x128xf32>
    %15 = vector.extract_strided_slice %14 {offsets = [0, 0], sizes = [16, 128], strides = [1, 1]} : vector<32x128xf32> to vector<16x128xf32>
    %16 = vector.extract_strided_slice %14 {offsets = [16, 0], sizes = [16, 128], strides = [1, 1]} : vector<32x128xf32> to vector<16x128xf32>
    %17 = arith.mulf %15, %15 : vector<16x128xf32>
    %18 = arith.mulf %16, %16 : vector<16x128xf32>
    %19 = arith.addf %17, %18 : vector<16x128xf32>
    %20 = math.sqrt %19 : vector<16x128xf32>
    %c0_21 = arith.constant 0 : index
    %c0_22 = arith.constant 0 : index
    %c0_23 = arith.constant 0 : index
    %21 = vector.load %arg4[%c0_21, %c0_22, %c0_23] : memref<1x16x128xf32, #tpu.memory_space<vmem>>, vector<1x16x128xf32>
    %22 = vector.shape_cast %21 : vector<1x16x128xf32> to vector<16x128xf32>
    %23 = vector.shape_cast %20 : vector<16x128xf32> to vector<1x16x128xf32>
    tpu.vector_store %arg4[%c0_21, %c0_22, %c0_23], %23 {strides = array<i32>} : memref<1x16x128xf32, #tpu.memory_space<vmem>>, vector<1x16x128xf32>,
    %24 = math.atan2 %16, %15 : vector<16x128xf32>
    %c0_24 = arith.constant 0 : index
    %c0_25 = arith.constant 0 : index
    %c0_26 = arith.constant 0 : index
    %25 = vector.load %arg5[%c0_24, %c0_25, %c0_26] : memref<1x16x128xf32, #tpu.memory_space<vmem>>, vector<1x16x128xf32>
    %26 = vector.shape_cast %25 : vector<1x16x128xf32> to vector<16x128xf32>
    %27 = vector.shape_cast %24 : vector<16x128xf32> to vector<1x16x128xf32>
    tpu.vector_store %arg5[%c0_24, %c0_25, %c0_26], %27 {strides = array<i32>} : memref<1x16x128xf32, #tpu.memory_space<vmem>>, vector<1x16x128xf32>,
    return
  }
  func.func @transform_0(%arg0: i32, %arg1: i32) -> (i32, i32, i32, i32) {
    %c0_i32 = arith.constant 0 : i32
    %c0_i32_0 = arith.constant 0 : i32
    %c0_i32_1 = arith.constant 0 : i32
    return %arg0, %arg1, %c0_i32, %c0_i32_0 : i32, i32, i32, i32
  }
  func.func @transform_1(%arg0: i32, %arg1: i32) -> (i32, i32) {
    %c0_i32 = arith.constant 0 : i32
    %c0_i32_0 = arith.constant 0 : i32
    %c0_i32_1 = arith.constant 0 : i32
    return %c0_i32, %c0_i32_0 : i32, i32
  }
  func.func @transform_2(%arg0: i32, %arg1: i32) -> (i32, i32, i32) {
    %c0_i32 = arith.constant 0 : i32
    %c0_i32_0 = arith.constant 0 : i32
    return %arg0, %c0_i32, %arg1 : i32, i32, i32
  }
  func.func @transform_3(%arg0: i32, %arg1: i32) -> (i32, i32, i32) {
    %c0_i32 = arith.constant 0 : i32
    %c0_i32_0 = arith.constant 0 : i32
    return %arg0, %c0_i32, %arg1 : i32, i32, i32
  }
}

</mosaic_0001>

<bundles_post_ra>
// kernel: tpu_custom_call.1
= control target key start
LH: loop header
LB: loop body
LE: loop exit
PB: predicated region body
PF: predicated region fallthrough
CT: control target
= control target key end

     0   :  { %9 = vsyncpa [#allocation4], 0  ;;  %s3071_s0 = inlined_call_operand.vmem [shape: f32[2,1,131,4], index: 0, kind: input, shape index: {}]   ;;  %s3072_s1 = inlined_call_operand.vmem [shape: f32[32,16], index: 1, kind: input, shape index: {}]   ;;  %s3073_s2 = inlined_call_operand.hbm [shape: f32[2,16,128], index: 2, kind: output, shape index: {0}]   ;;  %s3074_s3 = inlined_call_operand.hbm [shape: f32[2,16,128], index: 3, kind: output, shape index: {1}]  }
   0x1   :  { %11 = vsyncpa [#allocation4 + $0x1], 0 }
   0x2   :  { %12 = vsyncpa [#allocation6], 0 }
   0x3   :  { %14 = vsyncpa [#allocation6 + $0x1], 0  ;;  %s2232_s12 = smov 0   ;;  %s2234_s13 = smov 0  }
   0x4   :  { %s2236_s14 = smov 0   ;;  %s2238_s15 = smov 0  }
   0x5   :  { %s2240_s16 = smov 0   ;;  %s2242_s17 = smov 0  }
   0x6 LB: > { %s1655_s18 = sadd.s32 4294967295, %s2202_s17   ;;  %s1656_s19 = sadd.s32 4294967294, %s2202_s17   ;;  %s2202_s17 = sphi %s2242_s17, %s20_s17   ;;  %s2198_s16 = sphi %s2240_s16, %s3093_s16   ;;  %s2194_s15 = sphi %s2238_s15, %s3092_s15   ;;  %s2190_s14 = sphi %s2236_s14, %s3091_s14   ;;  %s2186_s13 = sphi %s2234_s13, %s3090_s13   ;;  %s2182_s12 = sphi %s2232_s12, %s3089_s12  }
   0x7   : > { %s32_s20 = sadd.s32 1, %s2198_s16  ;;  %s90_s21 = sadd.s32 1, %s2190_s14 }
   0x8   : > { %p34_p0 = scmp.ge.s32.totalorder %s32_s20, 2  ;;  %p100_p1 = scmp.ne.s32.totalorder %s2190_s14, %s2186_s13 }
   0x9   : > { %p101_p2 = scmp.eq.s32.totalorder %s1655_s18, 1  ;;  %p106_p3 = scmp.ne.s32.totalorder %s2186_s13, %s2182_s12 }
   0xa   : > { %s3095_s20 = smov (%p34_p0, %s32_s20), 0  ;;  %p107_p5 = scmp.eq.s32.totalorder %s1656_s19, 1 }
   0xb   : > { %p2272_p4 = por %p101_p2, %p100_p1  ;;  %s85_s23 = ssub.s32 %s2198_s16, %s3095_s20 }
   0xc   : > { %p1659_p6 = scmp.ge.s32.totalorder %s2202_s17, 1  ;;  %p88_p7 = scmp.eq.s32.totalorder %s85_s23, 0 }
   0xd   : > { %p2279_p8 = por %p107_p5, %p106_p3  ;;  %p168_p9 = scmp.lt.s32.totalorder %s2202_s17, 3 }
   0xe   : > { %s2285_s25 = scalar_select %p88_p7, %s2190_s14, %s90_s21  }
   0xf   : > { %p169_p10 = pnand %p1659_p6, %p168_p9 }
  0x11   : > { %172 = sbr.rel (%p169_p10) target bundleno = 685 (0x2ad), region = 28 }
  0x16   : > { %p201_p11 = scmp.lt.s32.totalorder %s2194_s15, 1  ;;  %s2204_s4 = smov 4   ;;  %vm226_vm0 = vcmask 31744   ;;  %vm554_vm1 = vcmask 130048   ;;  %v534_v60 = vld [vmem:[%s3072_s1] sm:$0xff]  ;;  %vm323_vm2 = vcmask 64544  }
  0x17   : > { %s2205_s5 = smov 12   ;;  %s2206_s6 = smov 8   ;;  %v556_v61 = vsel %vm554_vm1, %v534_v60, 0  ;;  %vm420_vm3 = vcmask 97344   ;;  %vm517_vm4 = vcmask 130144  }
  0x18   : > { %s202_s26 = scalar_select %p201_p11, %s2194_s15, 1 }
  0x19   : > { %s2915_s23 = sand.u32 1, %s2186_s13   ;;  %s2207_s9 = smov [#allocation3]  }
  0x1a   : > { %s2021_s27 = smul.u32 136, %s202_s26  ;;  %s1660_s26 = sshll.u32 %s2915_s23, 4 }
  0x1b   : > { %s193_s28 = scalar_lea.vmem [#allocation3], %s1660_s26  ;;  %s1504_s7 = scalar_lea.sflag [#allocation4], %s2915_s23 }
  0x1c   : > { %s2292_s30 = scalar_lea.vmem %s3071_s0, %s2021_s27  ;;  %s1671_s27 = sshll.u32 %s2194_s15, 8 }
  0x1d   : > { %v258_v0 = vld [vmem:[%s2292_s30 + $0x79] sm:$0xff]  ;;  %v257_v3 = vld [vmem:[%s2292_s30 + $0x71] sm:$0xff]  ;;  %v256_v6 = vld [vmem:[%s2292_s30 + $0x69] sm:$0xff]  ;;  %s1523_s29 = sshll.u32 %s193_s28, 4  ;;  %s2100_s10 = sshll.u32 %s2207_s9, 4  ;;  %s2941_s29 = int_to_ptr.vmem [resolvable:$true] %s1523_s29  ;;  %s2101_s10 = int_to_ptr.vmem [resolvable:$false] %s2100_s10 }
  0x1e   : > { %v452_v1 = vld [vmem:[%s2292_s30 + $0x7b] sm:$0xff]  ;;  %305 = vrot.lane.b32.xlu0 %v258_v0, %s2204_s4  ;;  %v354_v4 = vld [vmem:[%s2292_s30 + $0x72] sm:$0xff]  ;;  %v353_v7 = vld [vmem:[%s2292_s30 + $0x6a] sm:$0xff]  ;;  %v2420_v0 = vand.u32 4294901760, %v556_v61  ;;  %s2096_s8 = scalar_lea.vmem %s2941_s29, 256  ;;  %s2102_s11 = scalar_lea.vmem %s2101_s10, 512 }
  0x1f   : > { %499 = vrot.lane.b32.xlu1 %v452_v1, %s2205_s5  ;;  %v355_v2 = vld [vmem:[%s2292_s30 + $0x7a] sm:$0xff]  ;;  %v450_v8 = vld [vmem:[%s2292_s30 + $0x6b] sm:$0xff]  ;;  %v352_v10 = vld [vmem:[%s2292_s30 + $0x62] sm:$0xff]  ;;  %p2097_p12 = scmp.ne.s32.totalorder %s2941_s29, %s2096_s8  ;;  %p2103_p1 = scmp.lt.s32.totalorder %s2941_s29, %s2101_s10 }
  0x20   : > { %v451_v5 = vld [vmem:[%s2292_s30 + $0x73] sm:$0xff]  ;;  %v255_v9 = vld [vmem:[%s2292_s30 + $0x61] sm:$0xff]  ;;  %v252_v26 = vld [vmem:[%s2292_s30 + $0x49] sm:$0xff]  ;;  %v2423_v1 = vsub.f32 %v556_v61, %v2420_v0  ;;  %1863 = vmatprep.mubr.f32.mxu1 %v2420_v0  ;;  %p2104_p2 = scmp.lt.s32.totalorder %s2102_s11, %s2096_s8 }
  0x21   : > { %v449_v11 = vld [vmem:[%s2292_s30 + $0x63] sm:$0xff]  ;;  %v225_v12 = vld [vmem:[%s2292_s30 + $0x78] sm:$0xff]  ;;  %v224_v13 = vld [vmem:[%s2292_s30 + $0x70] sm:$0xff]  ;;  %p2098_p13 = pnand %p2097_p12, %p2272_p4 }
  0x22   : > { %402 = vrot.lane.b32.xlu0 %v355_v2, %s2206_s6  ;;  %242 = vst.msk [vmem:[#allocation2 + $0x78] sm:$0xff] %vm226_vm0, %v225_v12  ;;  %v223_v14 = vld [vmem:[%s2292_s30 + $0x68] sm:$0xff]  ;;  %v222_v15 = vld [vmem:[%s2292_s30 + $0x60] sm:$0xff]  ;;  %241 = vst.msk [vmem:[#allocation2 + $0x70] sm:$0xff] %vm226_vm0, %v224_v13  ;;  %p2105_p3 = por %p2104_p2, %p2103_p1 }
  0x23   : > { %303 = vrot.lane.b32.xlu1 %v257_v3, %s2204_s4  ;;  %240 = vst.msk [vmem:[#allocation2 + $0x68] sm:$0xff] %vm226_vm0, %v223_v14  ;;  %239 = vst.msk [vmem:[#allocation2 + $0x60] sm:$0xff] %vm226_vm0, %v222_v15  ;;  %v221_v16 = vld [vmem:[%s2292_s30 + $0x58] sm:$0xff]  ;;  %v220_v17 = vld [vmem:[%s2292_s30 + $0x50] sm:$0xff]  ;;  %p2099_p0 = pneg %p2098_p13 }
  0x24   : > { %238 = vst.msk [vmem:[#allocation2 + $0x58] sm:$0xff] %vm226_vm0, %v221_v16  ;;  %237 = vst.msk [vmem:[#allocation2 + $0x50] sm:$0xff] %vm226_vm0, %v220_v17  ;;  %v254_v18 = vld [vmem:[%s2292_s30 + $0x59] sm:$0xff]  ;;  %v219_v20 = vld [vmem:[%s2292_s30 + $0x48] sm:$0xff] }
  0x25   : > { %v351_v19 = vld [vmem:[%s2292_s30 + $0x5a] sm:$0xff]  ;;  %236 = vst.msk [vmem:[#allocation2 + $0x48] sm:$0xff] %vm226_vm0, %v219_v20  ;;  %v253_v22 = vld [vmem:[%s2292_s30 + $0x51] sm:$0xff]  ;;  %v348_v32 = vld [vmem:[%s2292_s30 + $0x42] sm:$0xff]  ;;  %p2106_p5 = pnand %p2105_p3, %p2099_p0 }
  0x26   : > { %400 = vrot.lane.b32.xlu0 %v354_v4, %s2206_s6  ;;  %v448_v21 = vld [vmem:[%s2292_s30 + $0x5b] sm:$0xff]  ;;  %v350_v24 = vld [vmem:[%s2292_s30 + $0x52] sm:$0xff]  ;;  %v349_v27 = vld [vmem:[%s2292_s30 + $0x4a] sm:$0xff]  ;;  %v3076_v4 = vand.u32 4294901760, %v2423_v1 }
  0x27   : > { %497 = vrot.lane.b32.xlu1 %v451_v5, %s2205_s5  ;;  %v218_v23 = vld [vmem:[%s2292_s30 + $0x40] sm:$0xff]  ;;  %v447_v25 = vld [vmem:[%s2292_s30 + $0x53] sm:$0xff]  ;;  %v446_v29 = vld [vmem:[%s2292_s30 + $0x4b] sm:$0xff] }
  0x28   : > { %235 = vst.msk [vmem:[#allocation2 + $0x40] sm:$0xff] %vm226_vm0, %v218_v23  ;;  %v217_v28 = vld [vmem:[%s2292_s30 + $0x38] sm:$0xff]  ;;  %v251_v30 = vld [vmem:[%s2292_s30 + $0x41] sm:$0xff]  ;;  %v216_v31 = vld [vmem:[%s2292_s30 + $0x30] sm:$0xff]  ;;  %v699_v5 = vsub.f32 %v2423_v1, %v3076_v4 }
  0x29   : > { %234 = vst.msk [vmem:[#allocation2 + $0x38] sm:$0xff] %vm226_vm0, %v217_v28  ;;  %233 = vst.msk [vmem:[#allocation2 + $0x30] sm:$0xff] %vm226_vm0, %v216_v31  ;;  %v445_v33 = vld [vmem:[%s2292_s30 + $0x43] sm:$0xff]  ;;  %v250_v34 = vld [vmem:[%s2292_s30 + $0x39] sm:$0xff] }
  0x2a   : > { %301 = vrot.lane.b32.xlu0 %v256_v6, %s2204_s4  ;;  %v347_v35 = vld [vmem:[%s2292_s30 + $0x3a] sm:$0xff]  ;;  %v215_v36 = vld [vmem:[%s2292_s30 + $0x28] sm:$0xff]  ;;  %v249_v38 = vld [vmem:[%s2292_s30 + $0x31] sm:$0xff]  ;;  %v700_v6 = vand.u32 4294901760, %v699_v5 }
  0x2b   : > { %398 = vrot.lane.b32.xlu1 %v353_v7, %s2206_s6  ;;  %232 = vst.msk [vmem:[#allocation2 + $0x28] sm:$0xff] %vm226_vm0, %v215_v36  ;;  %v444_v37 = vld [vmem:[%s2292_s30 + $0x3b] sm:$0xff]  ;;  %v346_v40 = vld [vmem:[%s2292_s30 + $0x32] sm:$0xff]  ;;  %v248_v42 = vld [vmem:[%s2292_s30 + $0x29] sm:$0xff] }
  0x2c   : > { %v214_v39 = vld [vmem:[%s2292_s30 + $0x20] sm:$0xff]  ;;  %v443_v41 = vld [vmem:[%s2292_s30 + $0x33] sm:$0xff]  ;;  %v345_v43 = vld [vmem:[%s2292_s30 + $0x2a] sm:$0xff]  ;;  %1825 = vmatprep.mubr.f32.mxu0 %v700_v6 }
  0x2d   : > { %231 = vst.msk [vmem:[#allocation2 + $0x20] sm:$0xff] %vm226_vm0, %v214_v39  ;;  %v213_v44 = vld [vmem:[%s2292_s30 + $0x18] sm:$0xff]  ;;  %v442_v45 = vld [vmem:[%s2292_s30 + $0x2b] sm:$0xff]  ;;  %v247_v46 = vld [vmem:[%s2292_s30 + $0x21] sm:$0xff] }
  0x2e   : > { %495 = vrot.lane.b32.xlu0 %v450_v8, %s2205_s5  ;;  %230 = vst.msk [vmem:[#allocation2 + $0x18] sm:$0xff] %vm226_vm0, %v213_v44  ;;  %v212_v47 = vld [vmem:[%s2292_s30 + $0x10] sm:$0xff]  ;;  %v344_v48 = vld [vmem:[%s2292_s30 + $0x22] sm:$0xff]  ;;  %v246_v50 = vld [vmem:[%s2292_s30 + $0x19] sm:$0xff] }
  0x2f   : > { %299 = vrot.lane.b32.xlu1 %v255_v9, %s2204_s4  ;;  %229 = vst.msk [vmem:[#allocation2 + $0x10] sm:$0xff] %vm226_vm0, %v212_v47  ;;  %v441_v49 = vld [vmem:[%s2292_s30 + $0x23] sm:$0xff]  ;;  %v343_v51 = vld [vmem:[%s2292_s30 + $0x1a] sm:$0xff]  ;;  %v245_v54 = vld [vmem:[%s2292_s30 + $0x11] sm:$0xff] }
  0x30   : > { %v211_v52 = vld [vmem:[%s2292_s30 + $0x8] sm:$0xff]  ;;  %v440_v53 = vld [vmem:[%s2292_s30 + $0x1b] sm:$0xff]  ;;  %v342_v56 = vld [vmem:[%s2292_s30 + $0x12] sm:$0xff] }
  0x31   : > { %228 = vst.msk [vmem:[#allocation2 + $0x8] sm:$0xff] %vm226_vm0, %v211_v52  ;;  %v210_v55 = vld [vmem:[%s2292_s30] sm:$0xff]  ;;  %v439_v57 = vld [vmem:[%s2292_s30 + $0x13] sm:$0xff]  ;;  %v244_v58 = vld [vmem:[%s2292_s30 + $0x9] sm:$0xff] }
  0x32   : > { %396 = vrot.lane.b32.xlu0 %v352_v10, %s2206_s6  ;;  %227 = vst.msk [vmem:[#allocation2] sm:$0xff] %vm226_vm0, %v210_v55  ;;  %v341_v59 = vld [vmem:[%s2292_s30 + $0xa] sm:$0xff]  ;;  %v243_v63 = vld [vmem:[%s2292_s30 + $0x1] sm:$0xff] }
  0x33   : > { %493 = vrot.lane.b32.xlu1 %v449_v11, %s2205_s5  ;;  %v438_v62 = vld [vmem:[%s2292_s30 + $0xb] sm:$0xff]  ;;  %v340_v2 = vld [vmem:[%s2292_s30 + $0x2] sm:$0xff] }
  0x34   : > { %v437_v3 = vld [vmem:[%s2292_s30 + $0x3] sm:$0xff] }
  0x36   : > { %297 = vrot.lane.b32.xlu0 %v254_v18, %s2204_s4 }
  0x37   : > { %394 = vrot.lane.b32.xlu1 %v351_v19, %s2206_s6 }
  0x3a   : > { %491 = vrot.lane.b32.xlu0 %v448_v21, %s2205_s5 }
  0x3b   : > { %295 = vrot.lane.b32.xlu1 %v253_v22, %s2204_s4 }
  0x3e   : > { %392 = vrot.lane.b32.xlu0 %v350_v24, %s2206_s6 }
  0x3f   : > { %489 = vrot.lane.b32.xlu1 %v447_v25, %s2205_s5 }
  0x42   : > { %293 = vrot.lane.b32.xlu0 %v252_v26, %s2204_s4 }
  0x43   : > { %390 = vrot.lane.b32.xlu1 %v349_v27, %s2206_s6 }
  0x46   : > { %487 = vrot.lane.b32.xlu0 %v446_v29, %s2205_s5 }
  0x47   : > { %291 = vrot.lane.b32.xlu1 %v251_v30, %s2204_s4 }
  0x4a   : > { %388 = vrot.lane.b32.xlu0 %v348_v32, %s2206_s6 }
  0x4b   : > { %485 = vrot.lane.b32.xlu1 %v445_v33, %s2205_s5 }
  0x4e   : > { %289 = vrot.lane.b32.xlu0 %v250_v34, %s2204_s4 }
  0x4f   : > { %386 = vrot.lane.b32.xlu1 %v347_v35, %s2206_s6 }
  0x52   : > { %483 = vrot.lane.b32.xlu0 %v444_v37, %s2205_s5 }
  0x53   : > { %287 = vrot.lane.b32.xlu1 %v249_v38, %s2204_s4 }
  0x56   : > { %384 = vrot.lane.b32.xlu0 %v346_v40, %s2206_s6 }
  0x57   : > { %481 = vrot.lane.b32.xlu1 %v443_v41, %s2205_s5 }
  0x5a   : > { %285 = vrot.lane.b32.xlu0 %v248_v42, %s2204_s4 }
  0x5b   : > { %382 = vrot.lane.b32.xlu1 %v345_v43, %s2206_s6 }
  0x5e   : > { %479 = vrot.lane.b32.xlu0 %v442_v45, %s2205_s5 }
  0x5f   : > { %283 = vrot.lane.b32.xlu1 %v247_v46, %s2204_s4 }
  0x62   : > { %380 = vrot.lane.b32.xlu0 %v344_v48, %s2206_s6 }
  0x63   : > { %477 = vrot.lane.b32.xlu1 %v441_v49, %s2205_s5 }
  0x66   : > { %281 = vrot.lane.b32.xlu0 %v246_v50, %s2204_s4 }
  0x67   : > { %378 = vrot.lane.b32.xlu1 %v343_v51, %s2206_s6 }
  0x6a   : > { %475 = vrot.lane.b32.xlu0 %v440_v53, %s2205_s5 }
  0x6b   : > { %279 = vrot.lane.b32.xlu1 %v245_v54, %s2204_s4 }
  0x6e   : > { %376 = vrot.lane.b32.xlu0 %v342_v56, %s2206_s6 }
  0x6f   : > { %473 = vrot.lane.b32.xlu1 %v439_v57, %s2205_s5 }
  0x72   : > { %277 = vrot.lane.b32.xlu0 %v244_v58, %s2204_s4 }
  0x73   : > { %374 = vrot.lane.b32.xlu1 %v341_v59, %s2206_s6 }
  0x76   : > { %471 = vrot.lane.b32.xlu0 %v438_v62, %s2205_s5 }
  0x77   : > { %275 = vrot.lane.b32.xlu1 %v243_v63, %s2204_s4 }
  0x7a   : > { %372 = vrot.lane.b32.xlu0 %v340_v2, %s2206_s6 }
  0x7b   : > { %469 = vrot.lane.b32.xlu1 %v437_v3, %s2205_s5  ;;  %s2939_s5 = scalar_lea.hbm %s3073_s2, %s1671_s27 }
  0x90   : > { %v306_v7 = vpop.permute.xlu0 %305 }
  0x91   : > { %v500_v8 = vpop.permute.xlu1 %499  ;;  %339 = vst.msk [vmem:[#allocation2 + $0x78] sm:$0xff] %vm323_vm2, %v306_v7 }
  0x94   : > { %v403_v9 = vpop.permute.xlu0 %402 }
  0x95   : > { %v304_v10 = vpop.permute.xlu1 %303  ;;  %436 = vst.msk [vmem:[#allocation2 + $0x78] sm:$0xff] %vm420_vm3, %v403_v9 }
  0x96   : > { %338 = vst.msk [vmem:[#allocation2 + $0x70] sm:$0xff] %vm323_vm2, %v304_v10 }
  0x97   : > { %533 = vst.msk [vmem:[#allocation2 + $0x78] sm:$0xff] %vm517_vm4, %v500_v8 }
  0x98   : > { %v401_v11 = vpop.permute.xlu0 %400 }
  0x99   : > { %v498_v12 = vpop.permute.xlu1 %497  ;;  %435 = vst.msk [vmem:[#allocation2 + $0x70] sm:$0xff] %vm420_vm3, %v401_v11 }
  0x9a   : > { %532 = vst.msk [vmem:[#allocation2 + $0x70] sm:$0xff] %vm517_vm4, %v498_v12 }
  0x9c   : > { %v302_v13 = vpop.permute.xlu0 %301 }
  0x9d   : > { %v399_v14 = vpop.permute.xlu1 %398  ;;  %337 = vst.msk [vmem:[#allocation2 + $0x68] sm:$0xff] %vm323_vm2, %v302_v13 }
  0x9e   : > { %v553_v15 = vld [vmem:[#allocation2 + $0x78] sm:$0xff]  ;;  %434 = vst.msk [vmem:[#allocation2 + $0x68] sm:$0xff] %vm420_vm3, %v399_v14 }
  0x9f   : > { %v613_v16 = vsel %vm554_vm1, %v553_v15, 0 }
  0xa0   : > { %v2445_v17 = vand.u32 4294901760, %v613_v16  ;;  %v496_v18 = vpop.permute.xlu0 %495 }
  0xa1   : > { %v300_v19 = vpop.permute.xlu1 %299  ;;  %531 = vst.msk [vmem:[#allocation2 + $0x68] sm:$0xff] %vm517_vm4, %v496_v18  ;;  %v552_v20 = vld [vmem:[#allocation2 + $0x70] sm:$0xff] }
  0xa2   : > { %336 = vst.msk [vmem:[#allocation2 + $0x60] sm:$0xff] %vm323_vm2, %v300_v19  ;;  %1793 = vmatprep.subr.mxu0 %v2445_v17  ;;  %v2451_v21 = vsub.f32 %v613_v16, %v2445_v17  ;;  %v610_v22 = vsel %vm554_vm1, %v552_v20, 0 }
  0xa3   : > { %1794 = vmatpush3.xpose.msra.mxu0 %v2445_v17  ;;  %v2455_v23 = vand.u32 4294901760, %v610_v22 }
  0xa4   : > { %v2458_v24 = vand.u32 4294901760, %v2451_v21  ;;  %v397_v25 = vpop.permute.xlu0 %396 }
  0xa5   : > { %v494_v26 = vpop.permute.xlu1 %493  ;;  %433 = vst.msk [vmem:[#allocation2 + $0x60] sm:$0xff] %vm420_vm3, %v397_v25  ;;  %1795 = vmatprep.subr.mxu0 %v2455_v23  ;;  %v2465_v28 = vsub.f32 %v610_v22, %v2455_v23 }
  0xa6   : > { %v740_v27 = vsub.f32 %v2451_v21, %v2458_v24  ;;  %530 = vst.msk [vmem:[#allocation2 + $0x60] sm:$0xff] %vm517_vm4, %v494_v26 }
  0xa7   : > { %1796 = vmatpush3.xpose.msra.mxu0 %v2455_v23  ;;  %v2470_v30 = vand.u32 4294901760, %v2465_v28 }
  0xa8   : > { %v741_v29 = vand.u32 4294901760, %v740_v27  ;;  %v298_v31 = vpop.permute.xlu0 %297  ;;  %v551_v33 = vld [vmem:[#allocation2 + $0x68] sm:$0xff] }
  0xa9   : > { %v395_v32 = vpop.permute.xlu1 %394  ;;  %335 = vst.msk [vmem:[#allocation2 + $0x58] sm:$0xff] %vm323_vm2, %v298_v31  ;;  %v607_v34 = vsel %vm554_vm1, %v551_v33, 0  ;;  %v747_v35 = vsub.f32 %v2465_v28, %v2470_v30 }
  0xaa   : > { %1831 = vmatprep.subr.mxu1 %v741_v29  ;;  %432 = vst.msk [vmem:[#allocation2 + $0x58] sm:$0xff] %vm420_vm3, %v395_v32  ;;  %v2477_v36 = vand.u32 4294901760, %v607_v34 }
  0xab   : > { %1832 = vmatpush3.xpose.msra.mxu1 %v741_v29  ;;  %v748_v37 = vand.u32 4294901760, %v747_v35 }
  0xac   : > { %v492_v38 = vpop.permute.xlu0 %491  ;;  %1797 = vmatprep.subr.mxu0 %v2477_v36  ;;  %v2481_v40 = vsub.f32 %v607_v34, %v2477_v36 }
  0xad   : > { %v296_v39 = vpop.permute.xlu1 %295  ;;  %529 = vst.msk [vmem:[#allocation2 + $0x58] sm:$0xff] %vm517_vm4, %v492_v38  ;;  %1798 = vmatpush3.xpose.msra.mxu0 %v2477_v36  ;;  %1833 = vmatprep.subr.mxu1 %v748_v37  ;;  %v550_v41 = vld [vmem:[#allocation2 + $0x60] sm:$0xff] }
  0xae   : > { %334 = vst.msk [vmem:[#allocation2 + $0x50] sm:$0xff] %vm323_vm2, %v296_v39  ;;  %v604_v42 = vsel %vm554_vm1, %v550_v41, 0  ;;  %v2488_v43 = vand.u32 4294901760, %v2481_v40 }
  0xaf   : > { %1834 = vmatpush3.xpose.msra.mxu1 %v748_v37  ;;  %v2490_v44 = vand.u32 4294901760, %v604_v42 }
  0xb0   : > { %v393_v45 = vpop.permute.xlu0 %392  ;;  %v754_v47 = vsub.f32 %v2481_v40, %v2488_v43 }
  0xb1   : > { %v490_v46 = vpop.permute.xlu1 %489  ;;  %431 = vst.msk [vmem:[#allocation2 + $0x50] sm:$0xff] %vm420_vm3, %v393_v45  ;;  %1799 = vmatprep.subr.mxu0 %v2490_v44  ;;  %v2497_v48 = vsub.f32 %v604_v42, %v2490_v44 }
  0xb2   : > { %528 = vst.msk [vmem:[#allocation2 + $0x50] sm:$0xff] %vm517_vm4, %v490_v46  ;;  %1800 = vmatpush3.xpose.msra.mxu0 %v2490_v44  ;;  %v755_v49 = vand.u32 4294901760, %v754_v47 }
  0xb3   : > { %v2502_v50 = vand.u32 4294901760, %v2497_v48 }
  0xb4   : > { %v294_v51 = vpop.permute.xlu0 %293  ;;  %1835 = vmatprep.subr.mxu1 %v755_v49  ;;  %v549_v53 = vld [vmem:[#allocation2 + $0x58] sm:$0xff] }
  0xb5   : > { %v391_v52 = vpop.permute.xlu1 %390  ;;  %333 = vst.msk [vmem:[#allocation2 + $0x48] sm:$0xff] %vm323_vm2, %v294_v51  ;;  %1836 = vmatpush3.xpose.msra.mxu1 %v755_v49  ;;  %v601_v54 = vsel %vm554_vm1, %v549_v53, 0  ;;  %v761_v55 = vsub.f32 %v2497_v48, %v2502_v50 }
  0xb6   : > { %430 = vst.msk [vmem:[#allocation2 + $0x48] sm:$0xff] %vm420_vm3, %v391_v52  ;;  %v2509_v56 = vand.u32 4294901760, %v601_v54 }
  0xb7   : > { %v762_v57 = vand.u32 4294901760, %v761_v55 }
  0xb8   : > { %v488_v58 = vpop.permute.xlu0 %487  ;;  %1801 = vmatprep.subr.mxu0 %v2509_v56  ;;  %v2513_v60 = vsub.f32 %v601_v54, %v2509_v56 }
  0xb9   : > { %v292_v59 = vpop.permute.xlu1 %291  ;;  %527 = vst.msk [vmem:[#allocation2 + $0x48] sm:$0xff] %vm517_vm4, %v488_v58  ;;  %1802 = vmatpush3.xpose.msra.mxu0 %v2509_v56  ;;  %1837 = vmatprep.subr.mxu1 %v762_v57  ;;  %v548_v61 = vld [vmem:[#allocation2 + $0x50] sm:$0xff] }
  0xba   : > { %332 = vst.msk [vmem:[#allocation2 + $0x40] sm:$0xff] %vm323_vm2, %v292_v59  ;;  %1838 = vmatpush3.xpose.msra.mxu1 %v762_v57  ;;  %v598_v62 = vsel %vm554_vm1, %v548_v61, 0  ;;  %v2520_v63 = vand.u32 4294901760, %v2513_v60 }
  0xbb   : > { %v2522_v2 = vand.u32 4294901760, %v598_v62 }
  0xbc   : > { %v389_v3 = vpop.permute.xlu0 %388  ;;  %v768_v6 = vsub.f32 %v2513_v60, %v2520_v63 }
  0xbd   : > { %v486_v5 = vpop.permute.xlu1 %485  ;;  %429 = vst.msk [vmem:[#allocation2 + $0x40] sm:$0xff] %vm420_vm3, %v389_v3  ;;  %1803 = vmatprep.subr.mxu0 %v2522_v2  ;;  %v2529_v7 = vsub.f32 %v598_v62, %v2522_v2 }
  0xbe   : > { %526 = vst.msk [vmem:[#allocation2 + $0x40] sm:$0xff] %vm517_vm4, %v486_v5  ;;  %1804 = vmatpush3.xpose.msra.mxu0 %v2522_v2  ;;  %v769_v8 = vand.u32 4294901760, %v768_v6 }
  0xbf   : > { %v2534_v9 = vand.u32 4294901760, %v2529_v7 }
  0xc0   : > { %v290_v10 = vpop.permute.xlu0 %289  ;;  %1839 = vmatprep.subr.mxu1 %v769_v8  ;;  %v547_v12 = vld [vmem:[#allocation2 + $0x48] sm:$0xff] }
  0xc1   : > { %v387_v11 = vpop.permute.xlu1 %386  ;;  %331 = vst.msk [vmem:[#allocation2 + $0x38] sm:$0xff] %vm323_vm2, %v290_v10  ;;  %1840 = vmatpush3.xpose.msra.mxu1 %v769_v8  ;;  %v595_v13 = vsel %vm554_vm1, %v547_v12, 0  ;;  %v775_v14 = vsub.f32 %v2529_v7, %v2534_v9 }
  0xc2   : > { %428 = vst.msk [vmem:[#allocation2 + $0x38] sm:$0xff] %vm420_vm3, %v387_v11  ;;  %v2541_v15 = vand.u32 4294901760, %v595_v13 }
  0xc3   : > { %v776_v16 = vand.u32 4294901760, %v775_v14 }
  0xc4   : > { %v484_v18 = vpop.permute.xlu0 %483  ;;  %1805 = vmatprep.subr.mxu0 %v2541_v15  ;;  %v2545_v20 = vsub.f32 %v595_v13, %v2541_v15 }
  0xc5   : > { %v288_v19 = vpop.permute.xlu1 %287  ;;  %525 = vst.msk [vmem:[#allocation2 + $0x38] sm:$0xff] %vm517_vm4, %v484_v18  ;;  %1806 = vmatpush3.xpose.msra.mxu0 %v2541_v15  ;;  %1841 = vmatprep.subr.mxu1 %v776_v16  ;;  %v546_v22 = vld [vmem:[#allocation2 + $0x40] sm:$0xff] }
  0xc6   : > { %330 = vst.msk [vmem:[#allocation2 + $0x30] sm:$0xff] %vm323_vm2, %v288_v19  ;;  %1842 = vmatpush3.xpose.msra.mxu1 %v776_v16  ;;  %v592_v25 = vsel %vm554_vm1, %v546_v22, 0  ;;  %v2552_v26 = vand.u32 4294901760, %v2545_v20 }
  0xc7   : > { %v2554_v27 = vand.u32 4294901760, %v592_v25 }
  0xc8   : > { %v385_v29 = vpop.permute.xlu0 %384  ;;  %v782_v32 = vsub.f32 %v2545_v20, %v2552_v26 }
  0xc9   : > { %v482_v31 = vpop.permute.xlu1 %481  ;;  %427 = vst.msk [vmem:[#allocation2 + $0x30] sm:$0xff] %vm420_vm3, %v385_v29  ;;  %1807 = vmatprep.subr.mxu0 %v2554_v27  ;;  %v2561_v33 = vsub.f32 %v592_v25, %v2554_v27 }
  0xca   : > { %524 = vst.msk [vmem:[#allocation2 + $0x30] sm:$0xff] %vm517_vm4, %v482_v31  ;;  %1808 = vmatpush3.xpose.msra.mxu0 %v2554_v27  ;;  %v783_v34 = vand.u32 4294901760, %v782_v32 }
  0xcb   : > { %v2566_v35 = vand.u32 4294901760, %v2561_v33 }
  0xcc   : > { %v286_v37 = vpop.permute.xlu0 %285  ;;  %1843 = vmatprep.subr.mxu1 %v783_v34  ;;  %v545_v39 = vld [vmem:[#allocation2 + $0x38] sm:$0xff] }
  0xcd   : > { %v383_v38 = vpop.permute.xlu1 %382  ;;  %329 = vst.msk [vmem:[#allocation2 + $0x28] sm:$0xff] %vm323_vm2, %v286_v37  ;;  %1844 = vmatpush3.xpose.msra.mxu1 %v783_v34  ;;  %v589_v41 = vsel %vm554_vm1, %v545_v39, 0  ;;  %v789_v42 = vsub.f32 %v2561_v33, %v2566_v35 }
  0xce   : > { %426 = vst.msk [vmem:[#allocation2 + $0x28] sm:$0xff] %vm420_vm3, %v383_v38  ;;  %v2573_v45 = vand.u32 4294901760, %v589_v41 }
  0xcf   : > { %v790_v46 = vand.u32 4294901760, %v789_v42 }
  0xd0   : > { %v480_v47 = vpop.permute.xlu0 %479  ;;  %1809 = vmatprep.subr.mxu0 %v2573_v45  ;;  %v2577_v51 = vsub.f32 %v589_v41, %v2573_v45  ;;  %v535_v41 = vld [vmem:[%s3072_s1 + $0x8] sm:$0xff] }
  0xd1   : > { %v284_v49 = vpop.permute.xlu1 %283  ;;  %523 = vst.msk [vmem:[#allocation2 + $0x28] sm:$0xff] %vm517_vm4, %v480_v47  ;;  %1810 = vmatpush3.xpose.msra.mxu0 %v2573_v45  ;;  %1845 = vmatprep.subr.mxu1 %v790_v46  ;;  %v544_v52 = vld [vmem:[#allocation2 + $0x30] sm:$0xff] }
  0xd2   : > { %328 = vst.msk [vmem:[#allocation2 + $0x20] sm:$0xff] %vm323_vm2, %v284_v49  ;;  %1846 = vmatpush3.xpose.msra.mxu1 %v790_v46  ;;  %v586_v53 = vsel %vm554_vm1, %v544_v52, 0  ;;  %v2584_v54 = vand.u32 4294901760, %v2577_v51  ;;  %v536_v49 = vld [vmem:[%s3072_s1 + $0x10] sm:$0xff] }
  0xd3   : > { %v2586_v55 = vand.u32 4294901760, %v586_v53 }
  0xd4   : > { %v381_v57 = vpop.permute.xlu0 %380  ;;  %v796_v59 = vsub.f32 %v2577_v51, %v2584_v54 }
  0xd5   : > { %v478_v58 = vpop.permute.xlu1 %477  ;;  %425 = vst.msk [vmem:[#allocation2 + $0x20] sm:$0xff] %vm420_vm3, %v381_v57  ;;  %1811 = vmatprep.subr.mxu0 %v2586_v55  ;;  %v2593_v61 = vsub.f32 %v586_v53, %v2586_v55 }
  0xd6   : > { %522 = vst.msk [vmem:[#allocation2 + $0x20] sm:$0xff] %vm517_vm4, %v478_v58  ;;  %1812 = vmatpush3.xpose.msra.mxu0 %v2586_v55  ;;  %v797_v62 = vand.u32 4294901760, %v796_v59  ;;  %v559_v58 = vsel %vm554_vm1, %v535_v41, 0 }
  0xd7   : > { %v2598_v3 = vand.u32 4294901760, %v2593_v61 }
  0xd8   : > { %v282_v5 = vpop.permute.xlu0 %281  ;;  %1847 = vmatprep.subr.mxu1 %v797_v62  ;;  %v543_v8 = vld [vmem:[#allocation2 + $0x28] sm:$0xff] }
  0xd9   : > { %v379_v6 = vpop.permute.xlu1 %378  ;;  %327 = vst.msk [vmem:[#allocation2 + $0x18] sm:$0xff] %vm323_vm2, %v282_v5  ;;  %1848 = vmatpush3.xpose.msra.mxu1 %v797_v62  ;;  %v583_v10 = vsel %vm554_vm1, %v543_v8, 0  ;;  %v803_v11 = vsub.f32 %v2593_v61, %v2598_v3  ;;  %v562_v62 = vsel %vm554_vm1, %v536_v49, 0  ;;  %v537_v5 = vld [vmem:[%s3072_s1 + $0x18] sm:$0xff] }
  0xda   : > { %424 = vst.msk [vmem:[#allocation2 + $0x18] sm:$0xff] %vm420_vm3, %v379_v6  ;;  %v2605_v12 = vand.u32 4294901760, %v583_v10 }
  0xdb   : > { %v804_v13 = vand.u32 4294901760, %v803_v11 }
  0xdc   : > { %v476_v14 = vpop.permute.xlu0 %475  ;;  %1813 = vmatprep.subr.mxu0 %v2605_v12  ;;  %v2609_v18 = vsub.f32 %v583_v10, %v2605_v12 }
  0xdd   : > { %v280_v16 = vpop.permute.xlu1 %279  ;;  %521 = vst.msk [vmem:[#allocation2 + $0x18] sm:$0xff] %vm517_vm4, %v476_v14  ;;  %1814 = vmatpush3.xpose.msra.mxu0 %v2605_v12  ;;  %1849 = vmatprep.subr.mxu1 %v804_v13  ;;  %v542_v19 = vld [vmem:[#allocation2 + $0x20] sm:$0xff] }
  0xde   : > { %326 = vst.msk [vmem:[#allocation2 + $0x10] sm:$0xff] %vm323_vm2, %v280_v16  ;;  %1850 = vmatpush3.xpose.msra.mxu1 %v804_v13  ;;  %v580_v22 = vsel %vm554_vm1, %v542_v19, 0  ;;  %v2616_v25 = vand.u32 4294901760, %v2609_v18  ;;  %v2657_v13 = vand.u32 4294901760, %v559_v58  ;;  %v2663_v19 = vand.u32 4294901760, %v562_v62 }
  0xdf   : > { %v2618_v29 = vand.u32 4294901760, %v580_v22 }
  0xe0   : > { %v377_v31 = vpop.permute.xlu0 %376  ;;  %v810_v34 = vsub.f32 %v2609_v18, %v2616_v25  ;;  %v2683_v49 = vsub.f32 %v562_v62, %v2663_v19 }
  0xe1   : > { %v474_v32 = vpop.permute.xlu1 %473  ;;  %423 = vst.msk [vmem:[#allocation2 + $0x10] sm:$0xff] %vm420_vm3, %v377_v31  ;;  %1815 = vmatprep.subr.mxu0 %v2618_v29  ;;  %v2625_v37 = vsub.f32 %v580_v22, %v2618_v29  ;;  %v565_v22 = vsel %vm554_vm1, %v537_v5, 0 }
  0xe2   : > { %520 = vst.msk [vmem:[#allocation2 + $0x10] sm:$0xff] %vm517_vm4, %v474_v32  ;;  %1816 = vmatpush3.xpose.msra.mxu0 %v2618_v29  ;;  %v811_v38 = vand.u32 4294901760, %v810_v34  ;;  %v3079_v62 = vand.u32 4294901760, %v2683_v49 }
  0xe3   : > { %v2630_v39 = vand.u32 4294901760, %v2625_v37 }
  0xe4   : > { %v278_v42 = vpop.permute.xlu0 %277  ;;  %1851 = vmatprep.subr.mxu1 %v811_v38  ;;  %v541_v47 = vld [vmem:[#allocation2 + $0x18] sm:$0xff] }
  0xe5   : > { %v375_v46 = vpop.permute.xlu1 %374  ;;  %325 = vst.msk [vmem:[#allocation2 + $0x8] sm:$0xff] %vm323_vm2, %v278_v42  ;;  %1852 = vmatpush3.xpose.msra.mxu1 %v811_v38  ;;  %v577_v52 = vsel %vm554_vm1, %v541_v47, 0  ;;  %v817_v53 = vsub.f32 %v2625_v37, %v2630_v39  ;;  %v2676_v42 = vsub.f32 %v559_v58, %v2657_v13 }
  0xe6   : > { %422 = vst.msk [vmem:[#allocation2 + $0x8] sm:$0xff] %vm420_vm3, %v375_v46  ;;  %v2643_v57 = vand.u32 4294901760, %v577_v52  ;;  %v2678_v46 = vand.u32 4294901760, %v565_v22 }
  0xe7   : > { %v818_v59 = vand.u32 4294901760, %v817_v53  ;;  %v3075_v5 = vand.u32 4294901760, %v2676_v42 }
  0xe8   : > { %v472_v6 = vpop.permute.xlu0 %471  ;;  %1817 = vmatprep.subr.mxu0 %v2643_v57  ;;  %v2652_v10 = vsub.f32 %v577_v52, %v2643_v57 }
  0xe9   : > { %v276_v8 = vpop.permute.xlu1 %275  ;;  %519 = vst.msk [vmem:[#allocation2 + $0x8] sm:$0xff] %vm517_vm4, %v472_v6  ;;  %1818 = vmatpush3.xpose.msra.mxu0 %v2643_v57  ;;  %1853 = vmatprep.subr.mxu1 %v818_v59  ;;  %v540_v11 = vld [vmem:[#allocation2 + $0x10] sm:$0xff]  ;;  %v2693_v6 = vsub.f32 %v565_v22, %v2678_v46 }
  0xea   : > { %324 = vst.msk [vmem:[#allocation2] sm:$0xff] %vm323_vm2, %v276_v8  ;;  %1854 = vmatpush3.xpose.msra.mxu1 %v818_v59  ;;  %v574_v14 = vsel %vm554_vm1, %v540_v11, 0  ;;  %v2661_v16 = vand.u32 4294901760, %v2652_v10 }
  0xeb   : > { %v2666_v31 = vand.u32 4294901760, %v574_v14  ;;  %v3080_v22 = vand.u32 4294901760, %v2693_v6 }
  0xec   : > { %v373_v32 = vpop.permute.xlu0 %372  ;;  %v824_v38 = vsub.f32 %v2652_v10, %v2661_v16 }
  0xed   : > { %v470_v34 = vpop.permute.xlu1 %469  ;;  %421 = vst.msk [vmem:[#allocation2] sm:$0xff] %vm420_vm3, %v373_v32  ;;  %1819 = vmatprep.subr.mxu0 %v2666_v31  ;;  %v2673_v41 = vsub.f32 %v574_v14, %v2666_v31 }
  0xee   : > { %518 = vst.msk [vmem:[#allocation2] sm:$0xff] %vm517_vm4, %v470_v34  ;;  %1820 = vmatpush3.xpose.msra.mxu0 %v2666_v31  ;;  %v825_v47 = vand.u32 4294901760, %v824_v38  ;;  %v709_v34 = vsub.f32 %v2676_v42, %v3075_v5 }
  0xef   : > { %v2686_v52 = vand.u32 4294901760, %v2673_v41 }
  0xf0   : > { %1855 = vmatprep.subr.mxu1 %v825_v47  ;;  %v539_v53 = vld [vmem:[#allocation2 + $0x8] sm:$0xff]  ;;  %v710_v5 = vand.u32 4294901760, %v709_v34 }
  0xf1   : > { %3083 = vst [vmem:[#allocation9_spill] sm:$0xff] %v2686_v52  ;;  %1856 = vmatpush3.xpose.msra.mxu1 %v825_v47  ;;  %v571_v59 = vsel %vm554_vm1, %v539_v53, 0  ;;  %v831_v58 = vsub.f32 %v2673_v41, %v2686_v52  ;;  %v719_v53 = vsub.f32 %v2683_v49, %v3079_v62 }
  0xf2   : > { %v2695_v8 = vand.u32 4294901760, %v571_v59 }
  0xf3   : > { %v832_v11 = vand.u32 4294901760, %v831_v58  ;;  %v720_v52 = vand.u32 4294901760, %v719_v53 }
  0xf4   : > { %1821 = vmatprep.subr.mxu0 %v2695_v8  ;;  %v2700_v14 = vsub.f32 %v571_v59, %v2695_v8 }
  0xf5   : > { %1822 = vmatpush3.xpose.msra.mxu0 %v2695_v8  ;;  %1857 = vmatprep.subr.mxu1 %v832_v11  ;;  %v538_v32 = vld [vmem:[#allocation2] sm:$0xff] }
  0xf6   : > { %1858 = vmatpush3.xpose.msra.mxu1 %v832_v11  ;;  %v568_v38 = vsel %vm554_vm1, %v538_v32, 0  ;;  %v2709_v47 = vand.u32 4294901760, %v2700_v14  ;;  %v729_v11 = vsub.f32 %v2693_v6, %v3080_v22 }
  0xf7   : > { %v2714_v59 = vand.u32 4294901760, %v568_v38 }
  0xf8   : > { %v838_v58 = vsub.f32 %v2700_v14, %v2709_v47 }
  0xf9   : > { %1823 = vmatprep.subr.mxu0 %v2714_v59  ;;  %v2720_v4 = vsub.f32 %v568_v38, %v2714_v59  ;;  %v730_v38 = vand.u32 4294901760, %v729_v11 }
  0xfa   : > { %1824 = vmatpush3.xpose.msra.mxu0 %v2714_v59  ;;  %v839_v32 = vand.u32 4294901760, %v838_v58 }
  0xfb   : > { %1869 = vmatprep.subr.mxu0 %v2451_v21  ;;  %v2728_v62 = vand.u32 4294901760, %v2720_v4 }
  0xfc   : > { %1859 = vmatprep.subr.mxu1 %v839_v32 }
  0xfd   : > { %1860 = vmatpush3.xpose.msra.mxu1 %v839_v32  ;;  %1826 = vmatmul.mubr.f32.vlgmr.msra.gmra.mxu0 %v710_v5  ;;  %v845_v34 = vsub.f32 %v2720_v4, %v2728_v62 }
  0xfe   : > { %1870 = vmatpush3.xpose.msra.mxu0 %v2451_v21  ;;  %1828 = vmatprep.mubr.f32.mxu0 %v720_v52  ;;  %v3084_v21 = vand.u32 4294901760, %v2423_v1 }
  0xff   : > { %1871 = vmatprep.subr.mxu0 %v2465_v28  ;;  %v846_v22 = vand.u32 4294901760, %v845_v34 }
 0x101   : > { %1861 = vmatprep.subr.mxu1 %v846_v22  ;;  %1829 = vmatmul.mubr.f32.gmra.mxu0 %v730_v38 }
 0x102   : > { %1862 = vmatpush3.xpose.msra.mxu1 %v846_v22  ;;  %1872 = vmatpush3.xpose.msra.mxu0 %v2465_v28 }
 0x103   : > { %1873 = vmatprep.subr.mxu0 %v2481_v40  ;;  %1907 = vmatprep.subr.mxu1 %v2445_v17 }
 0x104   : > { %1901 = vmatprep.mubr.f32.mxu0 %v2423_v1  ;;  %v3085_v1 = vand.u32 4294901760, %v2676_v42 }
 0x105   : > { %1864 = vmatmul.mubr.f32.vlgmr.msra.gmra.mxu1 %v2657_v13 }
 0x106   : > { %1874 = vmatpush3.xpose.msra.mxu0 %v2481_v40  ;;  %1908 = vmatpush3.xpose.msra.mxu1 %v2445_v17 }
 0x107   : > { %1875 = vmatprep.subr.mxu0 %v2497_v48  ;;  %1909 = vmatprep.subr.mxu1 %v2455_v23 }
 0x108   : > { %1866 = vmatprep.mubr.f32.mxu1 %v2663_v19 }
 0x109   : > { %1867 = vmatmul.mubr.f32.gmra.mxu1 %v2678_v46 }
 0x10a   : > { %1876 = vmatpush3.xpose.msra.mxu0 %v2497_v48  ;;  %1910 = vmatpush3.xpose.msra.mxu1 %v2455_v23 }
 0x10b   : > { %1877 = vmatprep.subr.mxu0 %v2513_v60  ;;  %1911 = vmatprep.subr.mxu1 %v2477_v36 }
 0x10c   : > { %1939 = vmatprep.mubr.f32.mxu1 %v3084_v21 }
 0x10e   : > { %1878 = vmatpush3.xpose.msra.mxu0 %v2513_v60  ;;  %1912 = vmatpush3.xpose.msra.mxu1 %v2477_v36 }
 0x10f   : > { %1879 = vmatprep.subr.mxu0 %v2529_v7  ;;  %1913 = vmatprep.subr.mxu1 %v2490_v44 }
 0x112   : > { %1880 = vmatpush3.xpose.msra.mxu0 %v2529_v7  ;;  %1914 = vmatpush3.xpose.msra.mxu1 %v2490_v44 }
 0x113   : > { %1881 = vmatprep.subr.mxu0 %v2545_v20  ;;  %1915 = vmatprep.subr.mxu1 %v2509_v56 }
 0x116   : > { %1882 = vmatpush3.xpose.msra.mxu0 %v2545_v20  ;;  %1916 = vmatpush3.xpose.msra.mxu1 %v2509_v56 }
 0x117   : > { %1883 = vmatprep.subr.mxu0 %v2561_v33  ;;  %1917 = vmatprep.subr.mxu1 %v2522_v2 }
 0x11a   : > { %1884 = vmatpush3.xpose.msra.mxu0 %v2561_v33  ;;  %1918 = vmatpush3.xpose.msra.mxu1 %v2522_v2 }
 0x11b   : > { %1885 = vmatprep.subr.mxu0 %v2577_v51  ;;  %1919 = vmatprep.subr.mxu1 %v2541_v15 }
 0x11e   : > { %1886 = vmatpush3.xpose.msra.mxu0 %v2577_v51  ;;  %1920 = vmatpush3.xpose.msra.mxu1 %v2541_v15 }
 0x11f   : > { %1887 = vmatprep.subr.mxu0 %v2593_v61  ;;  %1921 = vmatprep.subr.mxu1 %v2554_v27 }
 0x122   : > { %1888 = vmatpush3.xpose.msra.mxu0 %v2593_v61  ;;  %1922 = vmatpush3.xpose.msra.mxu1 %v2554_v27 }
 0x123   : > { %1889 = vmatprep.subr.mxu0 %v2609_v18  ;;  %1923 = vmatprep.subr.mxu1 %v2573_v45 }
 0x126   : > { %1890 = vmatpush3.xpose.msra.mxu0 %v2609_v18  ;;  %1924 = vmatpush3.xpose.msra.mxu1 %v2573_v45 }
 0x127   : > { %1891 = vmatprep.subr.mxu0 %v2625_v37  ;;  %1925 = vmatprep.subr.mxu1 %v2586_v55 }
 0x12a   : > { %1892 = vmatpush3.xpose.msra.mxu0 %v2625_v37  ;;  %1926 = vmatpush3.xpose.msra.mxu1 %v2586_v55 }
 0x12b   : > { %1893 = vmatprep.subr.mxu0 %v2652_v10  ;;  %1927 = vmatprep.subr.mxu1 %v2605_v12 }
 0x12e   : > { %1894 = vmatpush3.xpose.msra.mxu0 %v2652_v10  ;;  %1928 = vmatpush3.xpose.msra.mxu1 %v2605_v12 }
 0x12f   : > { %1895 = vmatprep.subr.mxu0 %v2673_v41  ;;  %1929 = vmatprep.subr.mxu1 %v2618_v29 }
 0x132   : > { %1896 = vmatpush3.xpose.msra.mxu0 %v2673_v41  ;;  %1930 = vmatpush3.xpose.msra.mxu1 %v2618_v29 }
 0x133   : > { %1897 = vmatprep.subr.mxu0 %v2700_v14  ;;  %1931 = vmatprep.subr.mxu1 %v2643_v57 }
 0x136   : > { %1898 = vmatpush3.xpose.msra.mxu0 %v2700_v14  ;;  %1932 = vmatpush3.xpose.msra.mxu1 %v2643_v57 }
 0x137   : > { %1899 = vmatprep.subr.mxu0 %v2720_v4  ;;  %1933 = vmatprep.subr.mxu1 %v2666_v31 }
 0x13a   : > { %1900 = vmatpush3.xpose.msra.mxu0 %v2720_v4  ;;  %1934 = vmatpush3.xpose.msra.mxu1 %v2666_v31  ;;  %v3086_v4 = vand.u32 4294901760, %v2683_v49 }
 0x13b   : > { %1935 = vmatprep.subr.mxu1 %v2695_v8  ;;  %1945 = vmatprep.subr.mxu0 %v2458_v24 }
 0x13d   : > { %1902 = vmatmul.mubr.f32.vlgmr.msra.gmra.mxu0 %v2676_v42 }
 0x13e   : > { %1936 = vmatpush3.xpose.msra.mxu1 %v2695_v8  ;;  %1946 = vmatpush3.xpose.msra.mxu0 %v2458_v24  ;;  %v3087_v24 = vand.u32 4294901760, %v2693_v6 }
 0x13f   : > { %1937 = vmatprep.subr.mxu1 %v2714_v59  ;;  %1947 = vmatprep.subr.mxu0 %v2470_v30 }
 0x140   : > { %1904 = vmatprep.mubr.f32.mxu0 %v2683_v49 }
 0x141   : > { %1905 = vmatmul.mubr.f32.gmra.mxu0 %v2693_v6 }
 0x142   : > { %1938 = vmatpush3.xpose.msra.mxu1 %v2714_v59  ;;  %1948 = vmatpush3.xpose.msra.mxu0 %v2470_v30 }
 0x143   : > { %1949 = vmatprep.subr.mxu0 %v2488_v43  ;;  %1983 = vmatprep.subr.mxu1 %v2445_v17 }
 0x144   : > { %1977 = vmatprep.mubr.f32.mxu0 %v2420_v0 }
 0x145   : > { %1940 = vmatmul.mubr.f32.vlgmr.msra.gmra.mxu1 %v3085_v1 }
 0x146   : > { %1950 = vmatpush3.xpose.msra.mxu0 %v2488_v43  ;;  %1984 = vmatpush3.xpose.msra.mxu1 %v2445_v17 }
 0x147   : > { %1951 = vmatprep.subr.mxu0 %v2502_v50  ;;  %1985 = vmatprep.subr.mxu1 %v2455_v23 }
 0x148   : > { %1942 = vmatprep.mubr.f32.mxu1 %v3086_v4 }
 0x149   : > { %1943 = vmatmul.mubr.f32.gmra.mxu1 %v3087_v24 }
 0x14a   : > { %1952 = vmatpush3.xpose.msra.mxu0 %v2502_v50  ;;  %1986 = vmatpush3.xpose.msra.mxu1 %v2455_v23 }
 0x14b   : > { %1953 = vmatprep.subr.mxu0 %v2520_v63  ;;  %1987 = vmatprep.subr.mxu1 %v2477_v36 }
 0x14c   : > { %2015 = vmatprep.mubr.f32.mxu1 %v2420_v0  ;;  %v3088_v0 = vld [vmem:[#allocation9_spill] sm:$0xff] }
 0x14e   : > { %1954 = vmatpush3.xpose.msra.mxu0 %v2520_v63  ;;  %1988 = vmatpush3.xpose.msra.mxu1 %v2477_v36 }
 0x14f   : > { %1955 = vmatprep.subr.mxu0 %v2534_v9  ;;  %1989 = vmatprep.subr.mxu1 %v2490_v44 }
 0x152   : > { %1956 = vmatpush3.xpose.msra.mxu0 %v2534_v9  ;;  %1990 = vmatpush3.xpose.msra.mxu1 %v2490_v44 }
 0x153   : > { %1957 = vmatprep.subr.mxu0 %v2552_v26  ;;  %1991 = vmatprep.subr.mxu1 %v2509_v56 }
 0x156   : > { %1958 = vmatpush3.xpose.msra.mxu0 %v2552_v26  ;;  %1992 = vmatpush3.xpose.msra.mxu1 %v2509_v56 }
 0x157   : > { %1959 = vmatprep.subr.mxu0 %v2566_v35  ;;  %1993 = vmatprep.subr.mxu1 %v2522_v2 }
 0x15a   : > { %1960 = vmatpush3.xpose.msra.mxu0 %v2566_v35  ;;  %1994 = vmatpush3.xpose.msra.mxu1 %v2522_v2 }
 0x15b   : > { %1961 = vmatprep.subr.mxu0 %v2584_v54  ;;  %1995 = vmatprep.subr.mxu1 %v2541_v15 }
 0x15e   : > { %1962 = vmatpush3.xpose.msra.mxu0 %v2584_v54  ;;  %1996 = vmatpush3.xpose.msra.mxu1 %v2541_v15 }
 0x15f   : > { %1963 = vmatprep.subr.mxu0 %v2598_v3  ;;  %1997 = vmatprep.subr.mxu1 %v2554_v27 }
 0x162   : > { %1964 = vmatpush3.xpose.msra.mxu0 %v2598_v3  ;;  %1998 = vmatpush3.xpose.msra.mxu1 %v2554_v27 }
 0x163   : > { %1965 = vmatprep.subr.mxu0 %v2616_v25  ;;  %1999 = vmatprep.subr.mxu1 %v2573_v45 }
 0x166   : > { %1966 = vmatpush3.xpose.msra.mxu0 %v2616_v25  ;;  %2000 = vmatpush3.xpose.msra.mxu1 %v2573_v45 }
 0x167   : > { %1967 = vmatprep.subr.mxu0 %v2630_v39  ;;  %2001 = vmatprep.subr.mxu1 %v2586_v55 }
 0x16a   : > { %1968 = vmatpush3.xpose.msra.mxu0 %v2630_v39  ;;  %2002 = vmatpush3.xpose.msra.mxu1 %v2586_v55 }
 0x16b   : > { %1969 = vmatprep.subr.mxu0 %v2661_v16  ;;  %2003 = vmatprep.subr.mxu1 %v2605_v12 }
 0x16e   : > { %1970 = vmatpush3.xpose.msra.mxu0 %v2661_v16  ;;  %2004 = vmatpush3.xpose.msra.mxu1 %v2605_v12 }
 0x16f   : > { %1971 = vmatprep.subr.mxu0 %v3088_v0  ;;  %2005 = vmatprep.subr.mxu1 %v2618_v29 }
 0x172   : > { %1972 = vmatpush3.xpose.msra.mxu0 %v3088_v0  ;;  %2006 = vmatpush3.xpose.msra.mxu1 %v2618_v29 }
 0x173   : > { %1973 = vmatprep.subr.mxu0 %v2709_v47  ;;  %2007 = vmatprep.subr.mxu1 %v2643_v57 }
 0x176   : > { %1974 = vmatpush3.xpose.msra.mxu0 %v2709_v47  ;;  %2008 = vmatpush3.xpose.msra.mxu1 %v2643_v57 }
 0x177   : > { %1975 = vmatprep.subr.mxu0 %v2728_v62  ;;  %2009 = vmatprep.subr.mxu1 %v2666_v31 }
 0x17a   : > { %1976 = vmatpush3.xpose.msra.mxu0 %v2728_v62  ;;  %2010 = vmatpush3.xpose.msra.mxu1 %v2666_v31 }
 0x17b   : > { %2011 = vmatprep.subr.mxu1 %v2695_v8 }
 0x17d   : > { %1978 = vmatmul.mubr.f32.vlgmr.msra.gmra.mxu0 %v2657_v13 }
 0x17e   : > { %2012 = vmatpush3.xpose.msra.mxu1 %v2695_v8  ;;  %1980 = vmatprep.mubr.f32.mxu0 %v2663_v19 }
 0x17f   : > { %2013 = vmatprep.subr.mxu1 %v2714_v59 }
 0x181   : > { %1981 = vmatmul.mubr.f32.gmra.mxu0 %v2678_v46 }
 0x182   : > { %2014 = vmatpush3.xpose.msra.mxu1 %v2714_v59 }
 0x185   : > { %2016 = vmatmul.mubr.f32.vlgmr.msra.gmra.mxu1 %v2657_v13 }
 0x186   : > { %2018 = vmatprep.mubr.f32.mxu1 %v2663_v19 }
 0x189   : > { %2019 = vmatmul.mubr.f32.gmra.mxu1 %v2678_v46 }
 0x1bd   : > { %v1827_v17 = vpop.f32.mrf.mxu0 }
 0x1bf   : > { %v702_v23 = vpop.f32.mrf.mxu0 }
 0x1c1   : > { %v1830_v28 = vpop.f32.mrf.mxu0 }
 0x1c3   : > { %v722_v36 = vpop.f32.mrf.mxu0 }
 0x1c5   : > { %v1865_v30 = vpop.f32.mrf.mxu1 }
 0x1c6   : > { %v890_v15 = vadd.f32 %v1865_v30, %v1827_v17 }
 0x1c7   : > { %v883_v40 = vpop.f32.mrf.mxu1 }
 0x1c8   : > { %v884_v33 = vadd.f32 %v883_v40, %v702_v23 }
 0x1c9   : > { %v1868_v44 = vpop.f32.mrf.mxu1 }
 0x1ca   : > { %v902_v20 = vadd.f32 %v1868_v44, %v1830_v28 }
 0x1cb   : > { %v895_v50 = vpop.f32.mrf.mxu1 }
 0x1cc   : > { %v896_v45 = vadd.f32 %v895_v50, %v722_v36 }
 0x1fd   : > { %v1903_v43 = vpop.f32.mrf.mxu0 }
 0x1fe   : > { %v1013_v27 = vadd.f32 %v1903_v43, %v890_v15 }
 0x1ff   : > { %v1005_v48 = vpop.f32.mrf.mxu0 }
 0x200   : > { %v1006_v55 = vadd.f32 %v1005_v48, %v884_v33 }
 0x201   : > { %v1906_v56 = vpop.f32.mrf.mxu0 }
 0x202   : > { %v1027_v51 = vadd.f32 %v1906_v56, %v902_v20 }
 0x203   : > { %v1019_v63 = vpop.f32.mrf.mxu0 }
 0x204   : > { %v1020_v37 = vadd.f32 %v1019_v63, %v896_v45 }
 0x205   : > { %v1941_v60 = vpop.f32.mrf.mxu1 }
 0x206   : > { %v1124_v54 = vadd.f32 %v1941_v60, %v1013_v27 }
 0x207   : > { %v1115_v2 = vpop.f32.mrf.mxu1 }
 0x208   : > { %v1116_v25 = vadd.f32 %v1115_v2, %v1006_v55 }
 0x209   : > { %v1944_v9 = vpop.f32.mrf.mxu1 }
 0x20a   : > { %v1140_v12 = vadd.f32 %v1944_v9, %v1027_v51 }
 0x20b   : > { %v1131_v35 = vpop.f32.mrf.mxu1 }
 0x20c   : > { %v1132_v19 = vadd.f32 %v1131_v35, %v1020_v37 }
 0x23d   : > { %v1979_v7 = vpop.f32.mrf.mxu0 }
 0x23e   : > { %v1265_v18 = vadd.f32 %v1979_v7, %v1124_v54 }
 0x23f   : > { %v1258_v26 = vpop.f32.mrf.mxu0 }
 0x240   : > { %v1259_v10 = vadd.f32 %v1258_v26, %v1116_v25 }
 0x241   : > { %v1982_v61 = vpop.f32.mrf.mxu0 }
 0x242   : > { %v1277_v39 = vadd.f32 %v1982_v61, %v1140_v12 }
 0x243   : > { %v1270_v13 = vpop.f32.mrf.mxu0 }
 0x244   : > { %v1271_v46 = vadd.f32 %v1270_v13, %v1132_v19 }
 0x245   : > { %v2017_v3 = vpop.f32.mrf.mxu1 }
 0x246   : > { %v2882_v57 = vadd.f32 %v2017_v3, %v1265_v18 }
 0x247   : > { %v1363_v29 = vpop.f32.mrf.mxu1 }
 0x248   : > { %v2886_v41 = vadd.f32 %v1363_v29, %v1259_v10  ;;  %v1386_v49 = vmul.f32 %v2882_v57, %v2882_v57  ;;  %v2893_v5 = vand.u32 2147483647, %v2882_v57 }
 0x249   : > { %v2020_v16 = vpop.f32.mrf.mxu1 }
 0x24a   : > { %v2884_v31 = vadd.f32 %v2020_v16, %v1277_v39  ;;  %v1385_v14 = vmul.f32 %v2886_v41, %v2886_v41  ;;  %v2905_v47 = vand.u32 2147483647, %v2886_v41 }
 0x24b   : > { %v1375_v42 = vpop.f32.mrf.mxu1 }
 0x24c   : > { %v1388_v52 = vmul.f32 %v2884_v31, %v2884_v31  ;;  %v2896_v6 = vand.u32 2147483647, %v2884_v31  ;;  %v2898_v62 = vadd.f32 %v1375_v42, %v1271_v46 }
 0x24e   : > { %v1390_v8 = vadd.f32 %v1388_v52, %v1386_v49  ;;  %v1457_v22 = vmax.f32 %v2893_v5, %v2896_v6  ;;  %v1387_v53 = vmul.f32 %v2898_v62, %v2898_v62  ;;  %v2910_v59 = vand.u32 2147483647, %v2898_v62 }
 0x24f   : > { %v1456_v34 = vmin.f32 %v2893_v5, %v2896_v6 }
 0x250   : > { %2088 = vrsqrt.f32 %v1390_v8  ;;  %v1389_v58 = vadd.f32 %v1387_v53, %v1385_v14  ;;  %v1410_v11 = vmax.f32 %v2905_v47, %v2910_v59  ;;  %vm1400_vm5 = vcmp.eq.f32.partialorder %v1390_v8, inf }
 0x251   : > { %2090 = vrcp.f32 %v1457_v22  ;;  %v1403_v4 = vand.u32 2147483648, %v1390_v8  ;;  %vm1402_vm6 = vcmp.eq.f32.partialorder %v1390_v8, 0.0  ;;  %v1409_v23 = vmin.f32 %v2905_v47, %v2910_v59 }
 0x252   : > { %2092 = vrsqrt.f32 %v1389_v58  ;;  %vm1393_vm7 = vcmp.eq.f32.partialorder %v1389_v58, inf  ;;  %v1396_v44 = vand.u32 2147483648, %v1389_v58  ;;  %vm1395_vm8 = vcmp.eq.f32.partialorder %v1389_v58, 0.0 }
 0x253   : > { %2094 = vrcp.f32 %v1410_v11 }
 0x25d   : > { %v2089_v32 = vpop.eup %2088 }
 0x25e   : > { %v2091_v38 = vpop.eup %2090  ;;  %v1399_v21 = vmul.f32 %v2089_v32, %v1390_v8 }
 0x25f   : > { %v2920_v1 = vmul.f32 %v2091_v38, %v1456_v34  ;;  %v2093_v0 = vpop.eup %2092 }
 0x260   : > { %v1401_v24 = vsel %vm1400_vm5, %v1390_v8, %v1399_v21  ;;  %v2095_v30 = vpop.eup %2094  ;;  %v1392_v36 = vmul.f32 %v2093_v0, %v1389_v58 }
 0x261   : > { %v2925_v17 = vmul.f32 %v2920_v1, %v2920_v1  ;;  %v1404_v28 = vsel %vm1402_vm6, %v1403_v4, %v1401_v24  ;;  %v2932_v43 = vmul.f32 %v2095_v30, %v1409_v23 }
 0x262   : > { %1406 = vst [vmem:[%s193_s28 + $0x8] sm:$0xff] %v1404_v28  ;;  %v1394_v48 = vsel %vm1393_vm7, %v1389_v58, %v1392_v36 }
 0x263   : > { %v1461_v40 = vmul.f32 0.002785687, %v2925_v17  ;;  %v1413_v56 = vmul.f32 %v2932_v43, %v2932_v43  ;;  %v1397_v60 = vsel %vm1395_vm8, %v1396_v44, %v1394_v48 }
 0x264   : > { %1405 = vst [vmem:[%s193_s28] sm:$0xff] %v1397_v60 }
 0x265   : > { %v1462_v50 = vadd.f32 -0.015866, %v1461_v40  ;;  %v1414_v2 = vmul.f32 0.002785687, %v1413_v56 }
 0x267   : > { %v1463_v63 = vmul.f32 %v1462_v50, %v2925_v17 }
 0x268   : > { %2109 = shalt.err (!%p2106_p5)
}
 0x269   : > { %s2110_s18 = scalar_lea.hbm %s2939_s5, 256  ;;  %s2114_s28 = scalar_lea.hbm %s3073_s2, 512 }
 0x26a   : > { %p2111_p6 = scmp.ne.s32.totalorder %s2939_s5, %s2110_s18  ;;  %p2115_p10 = scmp.lt.s32.totalorder %s2939_s5, %s3073_s2 }
 0x26b   : > { %p2116_p11 = scmp.lt.s32.totalorder %s2114_s28, %s2110_s18 }
 0x26c   : > { %p2112_p7 = pnand %p2111_p6, %p2272_p4 }
 0x26d   : > { %p2117_p12 = por %p2116_p11, %p2115_p10 }
 0x26e   : > { %p2113_p9 = pneg %p2112_p7 }
 0x270   : > { %p2118_p13 = pnand %p2117_p12, %p2113_p9 }
 0x272   : > { %2121 = shalt.err (!%p2118_p13)
}
 0x273   : > { %s2208_s8 = smov 128   ;;  %v1464_v7 = vadd.f32 0.04247222, %v1463_v63  ;;  %v1415_v9 = vadd.f32 -0.015866, %v1414_v2  ;;  %vm1484_vm9 = vcmp.lt.s32.totalorder %v2882_v57, 0  ;;  %vm1478_vm10 = vcmp.gt.f32.partialorder %v2896_v6, %v2893_v5  ;;  %s3021_s10 = scalar_lea.hbm %s3074_s3, %s1671_s27 }
 0x274   : > { %2022 = dma.vmem_to_hbm [thread:$0]  (%p2272_p4), %s2941_s29, 256, %s2939_s5, %s1504_s7, %s2208_s8, %s2208_s8, %s2206_s6   ;;  %vm1481_vm11 = vcmp.lt.f32.partialorder %v2882_v57, 0.0  ;;  %vm1489_vm12 = vcmp.ne.f32.partialorder %v2884_v31, %v2884_v31  ;;  %v2209_v11 = vmov 0.0   ;;  %vm1488_vm13 = vcmp.ne.f32.partialorder %v2882_v57, %v2882_v57 }
 0x275   : > { %v1465_v15 = vmul.f32 %v1464_v7, %v2925_v17  ;;  %v1416_v20 = vmul.f32 %v1415_v9, %v1413_v56  ;;  %v1485_v32 = vsel %vm1484_vm9, 3.1415927, %v2209_v11  ;;  %vm1495_vm14 = vcmp.eq.s32.totalorder %v2896_v6, inf  ;;  %vm1490_vm2 = vmor %vm1488_vm13, %vm1489_vm12  ;;  %s200_s29 = scalar_lea.vmem [#allocation5], %s1660_s26  ;;  %s1509_s11 = scalar_lea.sflag [#allocation6], %s2915_s23 }
 0x276   : > { %vm1437_vm15 = vcmp.lt.s32.totalorder %v2886_v41, 0  ;;  %vm1486_vm0 = vcmp.eq.f32.partialorder %v2884_v31, 0.0  ;;  %vm1431_vm1 = vcmp.gt.f32.partialorder %v2910_v59, %v2905_v47  ;;  %v2210_v21 = vmov 0.7853982   ;;  %s1540_s5 = sshll.u32 %s200_s29, 4  ;;  %s2211_s18 = smov [#allocation5]   ;;  %s3023_s5 = int_to_ptr.vmem [resolvable:$true] %s1540_s5 }
 0x277   : > { %v1466_v26 = vadd.f32 -0.074975304, %v1465_v15  ;;  %v1417_v27 = vadd.f32 0.04247222, %v1416_v20  ;;  %vm1494_vm3 = vcmp.eq.s32.totalorder %v2893_v5, inf  ;;  %vm1434_vm4 = vcmp.lt.f32.partialorder %v2886_v41, 0.0 }
 0x278   : > { %vm1442_vm5 = vcmp.ne.f32.partialorder %v2898_v62, %v2898_v62  ;;  %vm1496_vm6 = vmand %vm1494_vm3, %vm1495_vm14  ;;  %vm1441_vm7 = vcmp.ne.f32.partialorder %v2886_v41, %v2886_v41  ;;  %vm1448_vm8 = vcmp.eq.s32.totalorder %v2910_v59, inf  ;;  %v1499_v23 = vand.u32 2147483648, %v2884_v31  ;;  %s2122_s26 = scalar_lea.vmem %s3023_s5, 256  ;;  %s2126_s19 = sshll.u32 %s2211_s18, 4  ;;  %s2127_s19 = int_to_ptr.vmem [resolvable:$false] %s2126_s19 }
 0x279   : > { %v1467_v33 = vmul.f32 %v1466_v26, %v2925_v17  ;;  %v1418_v35 = vmul.f32 %v1417_v27, %v1413_v56  ;;  %vm1439_vm9 = vcmp.eq.f32.partialorder %v2898_v62, 0.0  ;;  %v1446_v36 = vsel %vm1434_vm4, 2.3561945, %v2210_v21  ;;  %p2123_p0 = scmp.ne.s32.totalorder %s3023_s5, %s2122_s26  ;;  %s2128_s15 = scalar_lea.vmem %s2127_s19, 512 }
 0x27a   : > { %p2129_p3 = scmp.lt.s32.totalorder %s3023_s5, %s2127_s19  ;;  %p2130_p5 = scmp.lt.s32.totalorder %s2128_s15, %s2122_s26 }
 0x27b   : > { %v1468_v45 = vadd.f32 0.1064488, %v1467_v33  ;;  %v1419_v51 = vadd.f32 -0.074975304, %v1418_v35  ;;  %p2124_p1 = pnand %p2123_p0, %p2272_p4 }
 0x27c   : > { %p2131_p6 = por %p2130_p5, %p2129_p3 }
 0x27d   : > { %v1469_v54 = vmul.f32 %v1468_v45, %v2925_v17  ;;  %v1420_v55 = vmul.f32 %v1419_v51, %v1413_v56  ;;  %p2125_p2 = pneg %p2124_p1 }
 0x27f   : > { %v1470_v61 = vadd.f32 -0.14207031, %v1469_v54  ;;  %v1421_v3 = vadd.f32 0.1064488, %v1420_v55  ;;  %p2132_p7 = pnand %p2131_p6, %p2125_p2 }
 0x281   : > { %v1471_v12 = vmul.f32 %v1470_v61, %v2925_v17  ;;  %v1422_v18 = vmul.f32 %v1421_v3, %v1413_v56 }
 0x283   : > { %v1472_v25 = vadd.f32 0.19993454, %v1471_v12  ;;  %v1423_v29 = vadd.f32 -0.14207031, %v1422_v18 }
 0x285   : > { %v1473_v37 = vmul.f32 %v1472_v25, %v2925_v17  ;;  %v1424_v39 = vmul.f32 %v1423_v29, %v1413_v56 }
 0x287   : > { %v1474_v10 = vadd.f32 -0.33333147, %v1473_v37  ;;  %v1425_v13 = vadd.f32 0.19993454, %v1424_v39 }
 0x289   : > { %v1475_v16 = vmul.f32 %v1474_v10, %v2925_v17  ;;  %v1426_v19 = vmul.f32 %v1425_v13, %v1413_v56  ;;  %v1438_v17 = vsel %vm1437_vm15, 3.1415927, %v2209_v11 }
 0x28b   : > { %v1476_v42 = vmul.f32 %v1475_v16, %v2920_v1  ;;  %v1427_v46 = vadd.f32 -0.33333147, %v1426_v19 }
 0x28d   : > { %v1477_v49 = vadd.f32 %v1476_v42, %v2920_v1  ;;  %v1428_v52 = vmul.f32 %v1427_v46, %v1413_v56  ;;  %v1493_v1 = vsel %vm1481_vm11, 2.3561945, %v2210_v21 }
 0x28f   : > { %v1479_v8 = vsub.f32 1.5707964, %v1477_v49  ;;  %v1429_v14 = vmul.f32 %v1428_v52, %v2932_v43 }
 0x291   : > { %v1480_v22 = vsel %vm1478_vm10, %v1479_v8, %v1477_v49  ;;  %v1430_v53 = vadd.f32 %v1429_v14, %v2932_v43  ;;  %vm1443_vm10 = vmor %vm1441_vm7, %vm1442_vm5  ;;  %v1452_v43 = vand.u32 2147483648, %v2898_v62 }
 0x292   : > { %v1482_v58 = vsub.f32 3.1415927, %v1480_v22 }
 0x293   : > { %v1432_v34 = vsub.f32 1.5707964, %v1430_v53 }
 0x294   : > { %v1483_v38 = vsel %vm1481_vm11, %v1482_v58, %v1480_v22  ;;  %vm1447_vm11 = vcmp.eq.s32.totalorder %v2905_v47, inf }
 0x295   : > { %v1487_v4 = vsel %vm1486_vm0, %v1485_v32, %v1483_v38  ;;  %v1433_v24 = vsel %vm1431_vm1, %v1432_v34, %v1430_v53  ;;  %vm1449_vm12 = vmand %vm1447_vm11, %vm1448_vm8 }
 0x296   : > { %v1491_v57 = vsel %vm1490_vm2, nan, %v1487_v4  ;;  %v1435_v0 = vsub.f32 3.1415927, %v1433_v24 }
 0x297   : > { %v1497_v5 = vsel %vm1496_vm6, %v1493_v1, %v1491_v57 }
 0x298   : > { %v1436_v28 = vsel %vm1434_vm4, %v1435_v0, %v1433_v24  ;;  %v1498_v6 = vand.u32 2147483647, %v1497_v5 }
 0x299   : > { %v1440_v30 = vsel %vm1439_vm9, %v1438_v17, %v1436_v28 }
 0x29a   : > { %v1444_v40 = vsel %vm1443_vm10, nan, %v1440_v30  ;;  %v1500_v59 = vor.u32 %v1499_v23, %v1498_v6 }
 0x29b   : > { %v1450_v31 = vsel %vm1449_vm12, %v1446_v36, %v1444_v40 }
 0x29c   : > { %v1451_v44 = vand.u32 2147483647, %v1450_v31  ;;  %1502 = vst [vmem:[%s200_s29 + $0x8] sm:$0xff] %v1500_v59 }
 0x29e   : > { %v1453_v48 = vor.u32 %v1452_v43, %v1451_v44 }
 0x2a0   : > { %1501 = vst [vmem:[%s200_s29] sm:$0xff] %v1453_v48 }
 0x2a1   : > { %2135 = shalt.err (!%p2132_p7)
}
 0x2a2   : > { %s2136_s27 = scalar_lea.hbm %s3021_s10, 256  ;;  %s2140_s28 = scalar_lea.hbm %s3074_s3, 512 }
 0x2a3   : > { %p2137_p9 = scmp.ne.s32.totalorder %s3021_s10, %s2136_s27  ;;  %p2141_p12 = scmp.lt.s32.totalorder %s3021_s10, %s3074_s3 }
 0x2a4   : > { %p2142_p13 = scmp.lt.s32.totalorder %s2140_s28, %s2136_s27 }
 0x2a5   : > { %p2138_p10 = pnand %p2137_p9, %p2272_p4 }
 0x2a6   : > { %p2143_p0 = por %p2142_p13, %p2141_p12 }
 0x2a7   : > { %p2139_p11 = pneg %p2138_p10 }
 0x2a9   : > { %p2144_p1 = pnand %p2143_p0, %p2139_p11 }
 0x2ab   : > { %2147 = shalt.err (!%p2144_p1)
}
 0x2ac   : > { %2023 = dma.vmem_to_hbm [thread:$0]  (%p2272_p4), %s3023_s5, 256, %s3021_s10, %s1509_s11, %s2208_s8, %s2208_s8, %s2206_s6  }
 0x2ad PF: > { %p2033_p2 = scmp.ge.s32.totalorder %s2202_s17, 2  ;;  %s1555_s29 = sand.u32 1, %s2182_s12  }
 0x2ae   : > { %s1556_s7 = scalar_lea.sflag [#allocation4], %s1555_s29 }
 0x2af   : > { %p2027_p3 = pnand %p2033_p2, %p2279_p8 }
 0x2b1   : > { %p2028_p5 = pneg %p2027_p3 }
 0x2b3   : > { %2173 = dma.done.wait (%p2028_p5), %s1556_s7, 256  }
 0x2b4   : > { %2175 = vsyncadd (%p2028_p5), %s1556_s7, 4294967040  ;;  %s1565_s9 = scalar_lea.sflag [#allocation6], %s1555_s29 }
 0x2b5   : > { %2177 = dma.done.wait (%p2028_p5), %s1565_s9, 256  }
 0x2b6   : > { %2179 = vsyncadd (%p2028_p5), %s1565_s9, 4294967040  ;;  %s20_s17 = sadd.s32 1, %s2202_s17   ;;  %s3089_s12 = smov %s2186_s13 }
 0x2b7   : > { %p17_p6 = scmp.ge.s32.totalorder %s20_s17, 4   ;;  %s3090_s13 = smov %s2190_s14 }
 0x2b8   : > { %s3091_s14 = smov %s2285_s25  ;;  %s3092_s15 = smov %s2198_s16 }
 0x2b9   : > { %s3093_s16 = smov %s3095_s20  ;;  %19 = sbr.rel (!%p17_p6) target bundleno = 6 (0x6), region = 80 }
 0x2be   :  { %1570 = vsyncpa [#allocation4], 1 }
 0x2bf   :  { %1572 = vsyncpa [#allocation4 + $0x1], 1 }
 0x2c0   :  { %1573 = vsyncpa [#allocation6], 1 }
 0x2c1   :  { %1575 = vsyncpa [#allocation6 + $0x1], 1 }

</bundles_post_ra>
